<compile_context>
chip_gen: v7x
topology: tpu7x:2x2x1
jax: 0.10.0
libtpu: 0.0.40
codegen_flags: <defaults>
</compile_context>

<pallas_src>
import jax
import jax.numpy as jnp
from jax.experimental import pallas as pl
from jax.experimental.pallas import tpu as pltpu


def encoder_kernel(times_ref, x_ref,
                   w_ih_ref, w_hh_ref, b_gi_ref, b_hn_ref,
                   w_ode_ref, b_ode_ref,
                   w1_ref, b1_ref, w_mu2_ref, b_mu2_ref, w_sg2_ref, b_sg2_ref,
                   mu_ref, sigma_ref):
    f32 = jnp.float32
    bf16 = jnp.bfloat16

    Bh, h_size = mu_ref.shape            # batch rows handled by this grid step
    TB = x_ref.shape[1]                  # T * Bh
    T = TB // Bh
    hid = w_mu2_ref.shape[0]             # 128

    # ---- hoisted loop invariants ----
    w_ih = w_ih_ref[...]                                         # (x, 3h)  bf16
    w_hh = w_hh_ref[...]                                         # (h, 3h)  bf16
    w_ode = w_ode_ref[...]                                       # (h, h)   bf16
    b_hn = jnp.broadcast_to(b_hn_ref[...], (Bh, h_size))         # f32
    b_ode = jnp.broadcast_to(b_ode_ref[...], (Bh, h_size))       # f32

    # ---- input projection hoisted out of the serial recurrence (one matmul for all T) ----
    # x_ref[0] rows [i*Bh, (i+1)*Bh) correspond to trajs[:, T-1-i, :] (time already reversed).
    x_all = x_ref[0].astype(bf16)                                          # (T*Bh, x)
    gi_all = jnp.dot(x_all, w_ih, preferred_element_type=f32) + b_gi_ref[...]  # (T*Bh, 3h)

    def ode_func(h):
        # TODO(synk): caller-supplied ode_function replaced by fixed synthetic dynamics.
        return jnp.tanh(jnp.dot(h.astype(bf16), w_ode, preferred_element_type=f32) + b_ode)

    # h carried as a register value; T is small & static -> unrolled at trace time.
    # TODO(synk): switch to lax.fori_loop + pl.ds slicing if T grows beyond ~32.
    h = jnp.zeros((Bh, h_size), f32)
    for i in range(T):
        if i != 0:
            # one RK4 step (3/8 rule == torchdiffeq 'rk4' on a 2-point grid),
            # integrating backwards from t0 = times[T-i] to t1 = times[T-1-i].
            t0 = times_ref[T - i]
            t1 = times_ref[T - 1 - i]
            dt = t1 - t0
            k1 = ode_func(h)
            k2 = ode_func(h + dt * k1 * (1.0 / 3.0))
            k3 = ode_func(h + dt * (k2 - k1 * (1.0 / 3.0)))
            k4 = ode_func(h + dt * (k1 - k2 + k3))
            h = h + (k1 + 3.0 * (k2 + k3) + k4) * dt * 0.125

        gi = gi_all[i * Bh:(i + 1) * Bh, :]                                # (Bh, 3h), biases folded
        gh = jnp.dot(h.astype(bf16), w_hh, preferred_element_type=f32)     # (Bh, 3h)

        rz = jax.nn.sigmoid(gi[:, :2 * h_size] + gh[:, :2 * h_size])
        r = rz[:, :h_size]
        z = rz[:, h_size:]
        n = jnp.tanh(gi[:, 2 * h_size:] + r * (gh[:, 2 * h_size:] + b_hn))
        h = (1.0 - z) * n + z * h

    # ---- mu / sigma heads: fused first layer, two lane-aligned 128-deep second-layer dots ----
    hid_act = jnp.maximum(
        jnp.dot(h.astype(bf16), w1_ref[...], preferred_element_type=f32) + b1_ref[...], 0.0)
    hid_bf = hid_act.astype(bf16)                                          # (Bh, 256)
    mu = jnp.dot(hid_bf[:, :hid], w_mu2_ref[...], preferred_element_type=f32) + b_mu2_ref[...]
    sg = jnp.dot(hid_bf[:, hid:], w_sg2_ref[...], preferred_element_type=f32) + b_sg2_ref[...]

    mu_ref[...] = mu
    sigma_ref[...] = 0.1 + 0.9 * jax.nn.sigmoid(sg)


def encoder_forward(times, trajs, params):
    """times: (T,), trajs: (B, T, x_size) [PyTorch layout]. Returns (mu, sigma), each (B, h_size)."""
    B, T, x_size = trajs.shape
    h_size = params["w_hh"].shape[-1]
    f32, bf16 = jnp.float32, jnp.bfloat16

    times = times.astype(f32)
    trajs = trajs.astype(f32)

    # Batch blocking: large batches are split into blocks of 8 rows and run as a "parallel"
    # grid axis (uses v7x's second TensorCore; harmless on v5e/v6e which have one TC).
    if B >= 16 and B % 8 == 0:
        b_blk = 8
    else:
        b_blk = B
    nb = B // b_blk

    # Layout plumbing (one-time, wrapper side): reversed time, time-major, flattened per
    # batch block so the kernel does ONE input-projection matmul for all T steps.
    x_rev = trajs[:, ::-1, :]                                   # (B, T, x)
    x_tbx = jnp.transpose(x_rev, (1, 0, 2))                     # (T, B, x)
    x_blk = (x_tbx.reshape(T, nb, b_blk, x_size)
                  .transpose(1, 0, 2, 3)
                  .reshape(nb, T * b_blk, x_size))              # (nb, T*b_blk, x)

    # --- GRU weights fused into (x,3h)/(h,3h); input-side biases folded into one row ---
    w_ih = params["w_ih"].astype(f32)      # (3, x, h), gate order (r, z, n)
    w_hh = params["w_hh"].astype(f32)      # (3, h, h)
    b_ih = params["b_ih"].astype(f32)      # (3, 1, h)
    b_hh = params["b_hh"].astype(f32)      # (3, 1, h)

    w_ih_all = jnp.concatenate([w_ih[0], w_ih[1], w_ih[2]], axis=1).astype(bf16)     # (x, 3h)
    w_hh_all = jnp.concatenate([w_hh[0], w_hh[1], w_hh[2]], axis=1).astype(bf16)     # (h, 3h)
    b_gi = jnp.concatenate([b_ih[0] + b_hh[0], b_ih[1] + b_hh[1], b_ih[2]], axis=1)  # (1, 3h)
    b_hn = b_hh[2]                                                                   # (1, h)

    w_ode = params["w_ode"].astype(bf16)
    b_ode = params["b_ode"].astype(f32)

    # --- heads: first layers fused; second layers kept separate (lane-aligned halves) ---
    w_mu1, b_mu1 = params["w_mu1"].astype(f32), params["b_mu1"].astype(f32)
    w_sg1, b_sg1 = params["w_sg1"].astype(f32), params["b_sg1"].astype(f32)
    w1 = jnp.concatenate([w_mu1, w_sg1], axis=1).astype(bf16)    # (h, 256)
    b1 = jnp.concatenate([b_mu1, b_sg1], axis=1)                 # (1, 256)
    w_mu2, b_mu2 = params["w_mu2"].astype(bf16), params["b_mu2"].astype(f32)
    w_sg2, b_sg2 = params["w_sg2"].astype(bf16), params["b_sg2"].astype(f32)

    operands = (times, x_blk,
                w_ih_all, w_hh_all, b_gi, b_hn,
                w_ode, b_ode,
                w1, b1, w_mu2, b_mu2, w_sg2, b_sg2)

    # --- generation-aware VMEM budget (v7x: 64 MiB physical; v5e/v6e: 128 MiB) ---
    resident = sum(int(o.size) * o.dtype.itemsize for o in operands[1:])
    resident += 2 * B * h_size * 4  # outputs
    try:
        cap = int(pltpu.get_tpu_info().vmem_capacity_bytes)
    except Exception:
        cap = 64 * 2 ** 20          # conservative fallback (v7x physical VMEM)
    ceiling = max(cap - 16 * 2 ** 20, cap // 2)
    vmem_limit = int(min(ceiling, max(32 * 2 ** 20, 4 * resident)))

    def rep_spec(arr):
        zeros = (0,) * arr.ndim
        return pl.BlockSpec(arr.shape, lambda b: zeros)          # weights resident across blocks

    in_specs = [
        pl.BlockSpec(memory_space=pltpu.MemorySpace.SMEM),               # times -> SMEM scalars
        pl.BlockSpec((1, T * b_blk, x_size), lambda b: (b, 0, 0)),       # per-block trajectory slab
        rep_spec(w_ih_all), rep_spec(w_hh_all), rep_spec(b_gi), rep_spec(b_hn),
        rep_spec(w_ode), rep_spec(b_ode),
        rep_spec(w1), rep_spec(b1),
        rep_spec(w_mu2), rep_spec(b_mu2), rep_spec(w_sg2), rep_spec(b_sg2),
    ]
    out_specs = (pl.BlockSpec((b_blk, h_size), lambda b: (b, 0)),
                 pl.BlockSpec((b_blk, h_size), lambda b: (b, 0)))
    out_shape = (jax.ShapeDtypeStruct((B, h_size), f32),
                 jax.ShapeDtypeStruct((B, h_size), f32))

    # TODO(synk): if B*T*x grows to MiB scale, additionally stream the trajectory over a
    #             time-block grid axis ("arbitrary") with h carried in a VMEM scratch.
    mu, sigma = pl.pallas_call(
        encoder_kernel,
        grid=(nb,),
        in_specs=in_specs,
        out_specs=out_specs,
        out_shape=out_shape,
        compiler_params=pltpu.CompilerParams(
            dimension_semantics=("parallel",),
            vmem_limit_bytes=vmem_limit),
    )(*operands)
    return mu, sigma


def init_params(key, x_size, h_size):
    """Deterministic synthetic parameters (PyTorch-style uniform(-1/sqrt(fan_in), +)).
    Weights are stored already transposed for `x @ W` inside the kernel."""
    ks = jax.random.split(key, 14)

    def unif(k, shape, fan_in):
        bound = 1.0 / float(fan_in) ** 0.5
        return jax.random.uniform(k, shape, jnp.float32, -bound, bound)

    return {
        # GRUCell: stacked gates (r, z, n)
        "w_ih": unif(ks[0], (3, x_size, h_size), h_size),
        "w_hh": unif(ks[1], (3, h_size, h_size), h_size),
        "b_ih": unif(ks[2], (3, 1, h_size), h_size),
        "b_hh": unif(ks[3], (3, 1, h_size), h_size),
        # synthetic ODE dynamics
        "w_ode": unif(ks[4], (h_size, h_size), h_size),
        "b_ode": unif(ks[5], (1, h_size), h_size),
        # latent_mu MLP
        "w_mu1": unif(ks[6], (h_size, 128), h_size),
        "b_mu1": unif(ks[7], (1, 128), h_size),
        "w_mu2": unif(ks[8], (128, h_size), 128),
        "b_mu2": unif(ks[9], (1, h_size), 128),
        # latent_sigma MLP
        "w_sg1": unif(ks[10], (h_size, 128), h_size),
        "b_sg1": unif(ks[11], (1, 128), h_size),
        "w_sg2": unif(ks[12], (128, h_size), 128),
        "b_sg2": unif(ks[13], (1, h_size), 128),
    }


if __name__ == "__main__":
    key = jax.random.PRNGKey(0)
    k_params, k_traj, k_traj2 = jax.random.split(key, 3)

    B, T, x_size, h_size = 2, 8, 4, 32
    params = init_params(k_params, x_size, h_size)

    times = jnp.linspace(0.0, 1.0, T, dtype=jnp.float32)            # (T,)
    trajs = jax.random.normal(k_traj, (B, T, x_size), jnp.float32)  # (B, T, x_size)

    mu, sigma = encoder_forward(times, trajs, params)
    jax.block_until_ready((mu, sigma))
    assert mu.shape == (B, h_size) and sigma.shape == (B, h_size)
    assert bool(jnp.all(jnp.isfinite(mu)))
    assert bool(jnp.all((sigma >= 0.1 - 1e-5) & (sigma <= 1.0 + 1e-5)))

    # Also exercise the batch-blocked ("parallel" grid) path used for larger batches.
    B2 = 16
    trajs2 = jax.random.normal(k_traj2, (B2, T, x_size), jnp.float32)
    mu2, sigma2 = encoder_forward(times, trajs2, params)
    jax.block_until_ready((mu2, sigma2))
    assert mu2.shape == (B2, h_size) and sigma2.shape == (B2, h_size)
    assert bool(jnp.all(jnp.isfinite(mu2)))
    assert bool(jnp.all((sigma2 >= 0.1 - 1e-5) & (sigma2 <= 1.0 + 1e-5)))

    print("KERNEL_OK")
</pallas_src>

<mosaic_0001>
module attributes {stable_mosaic.version = 11 : i64} {
  func.func @encoder_kernel(%arg0: i32, %arg1: memref<8xf32, #tpu.memory_space<smem>>, %arg2: memref<1x16x4xf32, #tpu.memory_space<vmem>>, %arg3: memref<4x96xbf16, #tpu.memory_space<vmem>>, %arg4: memref<32x96xbf16, #tpu.memory_space<vmem>>, %arg5: memref<1x96xf32, #tpu.memory_space<vmem>>, %arg6: memref<1x32xf32, #tpu.memory_space<vmem>>, %arg7: memref<32x32xbf16, #tpu.memory_space<vmem>>, %arg8: memref<1x32xf32, #tpu.memory_space<vmem>>, %arg9: memref<32x256xbf16, #tpu.memory_space<vmem>>, %arg10: memref<1x256xf32, #tpu.memory_space<vmem>>, %arg11: memref<128x32xbf16, #tpu.memory_space<vmem>>, %arg12: memref<1x32xf32, #tpu.memory_space<vmem>>, %arg13: memref<128x32xbf16, #tpu.memory_space<vmem>>, %arg14: memref<1x32xf32, #tpu.memory_space<vmem>>, %arg15: memref<2x32xf32, #tpu.memory_space<vmem>>, %arg16: memref<2x32xf32, #tpu.memory_space<vmem>>) attributes {dimension_semantics = [#tpu.dimension_semantics<parallel>], iteration_bounds = array<i64: 1>, scalar_prefetch = 0 : i64, scratch_operands = 0 : i64, tpu.core_type = #tpu.core_type<tc>, window_params = [{transform_indices = @transform_0, window_bounds = array<i64: 8>}, {transform_indices = @transform_1, window_bounds = array<i64: 1, 16, 4>}, {pipeline_mode = #tpu.pipeline_mode<synchronous>, transform_indices = @transform_2, window_bounds = array<i64: 4, 96>}, {pipeline_mode = #tpu.pipeline_mode<synchronous>, transform_indices = @transform_3, window_bounds = array<i64: 32, 96>}, {pipeline_mode = #tpu.pipeline_mode<synchronous>, transform_indices = @transform_4, window_bounds = array<i64: 1, 96>}, {pipeline_mode = #tpu.pipeline_mode<synchronous>, transform_indices = @transform_5, window_bounds = array<i64: 1, 32>}, {pipeline_mode = #tpu.pipeline_mode<synchronous>, transform_indices = @transform_6, window_bounds = array<i64: 32, 32>}, {pipeline_mode = #tpu.pipeline_mode<synchronous>, transform_indices = @transform_7, window_bounds = array<i64: 1, 32>}, {pipeline_mode = #tpu.pipeline_mode<synchronous>, transform_indices = @transform_8, window_bounds = array<i64: 32, 256>}, {pipeline_mode = #tpu.pipeline_mode<synchronous>, transform_indices = @transform_9, window_bounds = array<i64: 1, 256>}, {pipeline_mode = #tpu.pipeline_mode<synchronous>, transform_indices = @transform_10, window_bounds = array<i64: 128, 32>}, {pipeline_mode = #tpu.pipeline_mode<synchronous>, transform_indices = @transform_11, window_bounds = array<i64: 1, 32>}, {pipeline_mode = #tpu.pipeline_mode<synchronous>, transform_indices = @transform_12, window_bounds = array<i64: 128, 32>}, {pipeline_mode = #tpu.pipeline_mode<synchronous>, transform_indices = @transform_13, window_bounds = array<i64: 1, 32>}, {transform_indices = @transform_14, window_bounds = array<i64: 2, 32>}, {transform_indices = @transform_15, window_bounds = array<i64: 2, 32>}]} {
    %c0 = arith.constant 0 : index
    %c0_0 = arith.constant 0 : index
    %0 = vector.load %arg3[%c0, %c0_0] : memref<4x96xbf16, #tpu.memory_space<vmem>>, vector<4x96xbf16>
    %c0_1 = arith.constant 0 : index
    %c0_2 = arith.constant 0 : index
    %1 = vector.load %arg4[%c0_1, %c0_2] : memref<32x96xbf16, #tpu.memory_space<vmem>>, vector<32x96xbf16>
    %c0_3 = arith.constant 0 : index
    %c0_4 = arith.constant 0 : index
    %2 = vector.load %arg7[%c0_3, %c0_4] : memref<32x32xbf16, #tpu.memory_space<vmem>>, vector<32x32xbf16>
    %c0_5 = arith.constant 0 : index
    %c0_6 = arith.constant 0 : index
    %3 = vector.load %arg6[%c0_5, %c0_6] : memref<1x32xf32, #tpu.memory_space<vmem>>, vector<1x32xf32>
    %4 = vector.shape_cast %3 : vector<1x32xf32> to vector<1x32xf32>
    %5 = vector.broadcast %4 : vector<1x32xf32> to vector<2x32xf32>
    %c0_7 = arith.constant 0 : index
    %c0_8 = arith.constant 0 : index
    %6 = vector.load %arg8[%c0_7, %c0_8] : memref<1x32xf32, #tpu.memory_space<vmem>>, vector<1x32xf32>
    %7 = vector.shape_cast %6 : vector<1x32xf32> to vector<1x32xf32>
    %8 = vector.broadcast %7 : vector<1x32xf32> to vector<2x32xf32>
    %c0_9 = arith.constant 0 : index
    %c0_10 = arith.constant 0 : index
    %c0_11 = arith.constant 0 : index
    %9 = vector.load %arg2[%c0_9, %c0_10, %c0_11] : memref<1x16x4xf32, #tpu.memory_space<vmem>>, vector<1x16x4xf32>
    %10 = vector.shape_cast %9 : vector<1x16x4xf32> to vector<16x4xf32>
    %11 = arith.truncf %10 : vector<16x4xf32> to vector<16x4xbf16>
    %cst = arith.constant dense<0.000000e+00> : vector<16x96xf32>
    %12 = tpu.matmul %11, %0, %cst {dimension_numbers = #tpu.dot_dimension_numbers<[1], [0], [0], [1], [0, 0, 1, 1], [], []>} : vector<16x4xbf16>, vector<4x96xbf16>, vector<16x96xf32> -> vector<16x96xf32>
    %c0_12 = arith.constant 0 : index
    %c0_13 = arith.constant 0 : index
    %13 = vector.load %arg5[%c0_12, %c0_13] : memref<1x96xf32, #tpu.memory_space<vmem>>, vector<1x96xf32>
    %14 = vector.broadcast %13 : vector<1x96xf32> to vector<16x96xf32>
    %15 = arith.addf %12, %14 : vector<16x96xf32>
    %cst_14 = arith.constant 0.000000e+00 : f32
    %16 = vector.broadcast %cst_14 : f32 to vector<2x32xf32>
    %17 = vector.extract_strided_slice %15 {offsets = [0, 0], sizes = [2, 96], strides = [1, 1]} : vector<16x96xf32> to vector<2x96xf32>
    %18 = arith.truncf %16 : vector<2x32xf32> to vector<2x32xbf16>
    %cst_15 = arith.constant dense<0.000000e+00> : vector<2x96xf32>
    %19 = tpu.matmul %18, %1, %cst_15 {dimension_numbers = #tpu.dot_dimension_numbers<[1], [0], [0], [1], [0, 0, 1, 1], [], []>} : vector<2x32xbf16>, vector<32x96xbf16>, vector<2x96xf32> -> vector<2x96xf32>
    %20 = vector.extract_strided_slice %17 {offsets = [0, 0], sizes = [2, 64], strides = [1, 1]} : vector<2x96xf32> to vector<2x64xf32>
    %21 = vector.extract_strided_slice %19 {offsets = [0, 0], sizes = [2, 64], strides = [1, 1]} : vector<2x96xf32> to vector<2x64xf32>
    %22 = arith.addf %20, %21 : vector<2x64xf32>
    %23 = arith.negf %22 : vector<2x64xf32>
    %24 = math.exp %23 : vector<2x64xf32>
    %cst_16 = arith.constant 1.000000e+00 : f32
    %25 = vector.broadcast %cst_16 : f32 to vector<2x64xf32>
    %26 = arith.addf %25, %24 : vector<2x64xf32>
    %27 = arith.divf %25, %26 : vector<2x64xf32>
    %28 = vector.extract_strided_slice %27 {offsets = [0, 0], sizes = [2, 32], strides = [1, 1]} : vector<2x64xf32> to vector<2x32xf32>
    %29 = vector.extract_strided_slice %27 {offsets = [0, 32], sizes = [2, 32], strides = [1, 1]} : vector<2x64xf32> to vector<2x32xf32>
    %30 = vector.extract_strided_slice %17 {offsets = [0, 64], sizes = [2, 32], strides = [1, 1]} : vector<2x96xf32> to vector<2x32xf32>
    %31 = vector.extract_strided_slice %19 {offsets = [0, 64], sizes = [2, 32], strides = [1, 1]} : vector<2x96xf32> to vector<2x32xf32>
    %32 = arith.addf %31, %5 : vector<2x32xf32>
    %33 = arith.mulf %28, %32 : vector<2x32xf32>
    %34 = arith.addf %30, %33 : vector<2x32xf32>
    %35 = math.tanh %34 : vector<2x32xf32>
    %cst_17 = arith.constant 1.000000e+00 : f32
    %36 = vector.broadcast %cst_17 : f32 to vector<2x32xf32>
    %37 = arith.subf %36, %29 : vector<2x32xf32>
    %38 = arith.mulf %37, %35 : vector<2x32xf32>
    %39 = arith.mulf %29, %16 : vector<2x32xf32>
    %40 = arith.addf %38, %39 : vector<2x32xf32>
    %c7 = arith.constant 7 : index
    %41 = memref.load %arg1[%c7] : memref<8xf32, #tpu.memory_space<smem>>
    %c6 = arith.constant 6 : index
    %42 = memref.load %arg1[%c6] : memref<8xf32, #tpu.memory_space<smem>>
    %43 = arith.subf %42, %41 : f32
    %44 = arith.truncf %40 : vector<2x32xf32> to vector<2x32xbf16>
    %cst_18 = arith.constant dense<0.000000e+00> : vector<2x32xf32>
    %45 = tpu.matmul %44, %2, %cst_18 {dimension_numbers = #tpu.dot_dimension_numbers<[1], [0], [0], [1], [0, 0, 1, 1], [], []>} : vector<2x32xbf16>, vector<32x32xbf16>, vector<2x32xf32> -> vector<2x32xf32>
    %46 = arith.addf %45, %8 : vector<2x32xf32>
    %47 = math.tanh %46 : vector<2x32xf32>
    %48 = vector.broadcast %43 : f32 to vector<2x32xf32>
    %49 = arith.mulf %48, %47 : vector<2x32xf32>
    %cst_19 = arith.constant 0.333333343 : f32
    %50 = vector.broadcast %cst_19 : f32 to vector<2x32xf32>
    %51 = arith.mulf %49, %50 : vector<2x32xf32>
    %52 = arith.addf %40, %51 : vector<2x32xf32>
    %53 = arith.truncf %52 : vector<2x32xf32> to vector<2x32xbf16>
    %cst_20 = arith.constant dense<0.000000e+00> : vector<2x32xf32>
    %54 = tpu.matmul %53, %2, %cst_20 {dimension_numbers = #tpu.dot_dimension_numbers<[1], [0], [0], [1], [0, 0, 1, 1], [], []>} : vector<2x32xbf16>, vector<32x32xbf16>, vector<2x32xf32> -> vector<2x32xf32>
    %55 = arith.addf %54, %8 : vector<2x32xf32>
    %56 = math.tanh %55 : vector<2x32xf32>
    %cst_21 = arith.constant 0.333333343 : f32
    %57 = vector.broadcast %cst_21 : f32 to vector<2x32xf32>
    %58 = arith.mulf %47, %57 : vector<2x32xf32>
    %59 = arith.subf %56, %58 : vector<2x32xf32>
    %60 = vector.broadcast %43 : f32 to vector<2x32xf32>
    %61 = arith.mulf %60, %59 : vector<2x32xf32>
    %62 = arith.addf %40, %61 : vector<2x32xf32>
    %63 = arith.truncf %62 : vector<2x32xf32> to vector<2x32xbf16>
    %cst_22 = arith.constant dense<0.000000e+00> : vector<2x32xf32>
    %64 = tpu.matmul %63, %2, %cst_22 {dimension_numbers = #tpu.dot_dimension_numbers<[1], [0], [0], [1], [0, 0, 1, 1], [], []>} : vector<2x32xbf16>, vector<32x32xbf16>, vector<2x32xf32> -> vector<2x32xf32>
    %65 = arith.addf %64, %8 : vector<2x32xf32>
    %66 = math.tanh %65 : vector<2x32xf32>
    %67 = arith.subf %47, %56 : vector<2x32xf32>
    %68 = arith.addf %67, %66 : vector<2x32xf32>
    %69 = vector.broadcast %43 : f32 to vector<2x32xf32>
    %70 = arith.mulf %69, %68 : vector<2x32xf32>
    %71 = arith.addf %40, %70 : vector<2x32xf32>
    %72 = arith.truncf %71 : vector<2x32xf32> to vector<2x32xbf16>
    %cst_23 = arith.constant dense<0.000000e+00> : vector<2x32xf32>
    %73 = tpu.matmul %72, %2, %cst_23 {dimension_numbers = #tpu.dot_dimension_numbers<[1], [0], [0], [1], [0, 0, 1, 1], [], []>} : vector<2x32xbf16>, vector<32x32xbf16>, vector<2x32xf32> -> vector<2x32xf32>
    %74 = arith.addf %73, %8 : vector<2x32xf32>
    %75 = math.tanh %74 : vector<2x32xf32>
    %76 = arith.addf %56, %66 : vector<2x32xf32>
    %cst_24 = arith.constant 3.000000e+00 : f32
    %77 = vector.broadcast %cst_24 : f32 to vector<2x32xf32>
    %78 = arith.mulf %77, %76 : vector<2x32xf32>
    %79 = arith.addf %47, %78 : vector<2x32xf32>
    %80 = arith.addf %79, %75 : vector<2x32xf32>
    %81 = vector.broadcast %43 : f32 to vector<2x32xf32>
    %82 = arith.mulf %80, %81 : vector<2x32xf32>
    %cst_25 = arith.constant 1.250000e-01 : f32
    %83 = vector.broadcast %cst_25 : f32 to vector<2x32xf32>
    %84 = arith.mulf %82, %83 : vector<2x32xf32>
    %85 = arith.addf %40, %84 : vector<2x32xf32>
    %86 = vector.extract_strided_slice %15 {offsets = [2, 0], sizes = [2, 96], strides = [1, 1]} : vector<16x96xf32> to vector<2x96xf32>
    %87 = arith.truncf %85 : vector<2x32xf32> to vector<2x32xbf16>
    %cst_26 = arith.constant dense<0.000000e+00> : vector<2x96xf32>
    %88 = tpu.matmul %87, %1, %cst_26 {dimension_numbers = #tpu.dot_dimension_numbers<[1], [0], [0], [1], [0, 0, 1, 1], [], []>} : vector<2x32xbf16>, vector<32x96xbf16>, vector<2x96xf32> -> vector<2x96xf32>
    %89 = vector.extract_strided_slice %86 {offsets = [0, 0], sizes = [2, 64], strides = [1, 1]} : vector<2x96xf32> to vector<2x64xf32>
    %90 = vector.extract_strided_slice %88 {offsets = [0, 0], sizes = [2, 64], strides = [1, 1]} : vector<2x96xf32> to vector<2x64xf32>
    %91 = arith.addf %89, %90 : vector<2x64xf32>
    %92 = arith.negf %91 : vector<2x64xf32>
    %93 = math.exp %92 : vector<2x64xf32>
    %cst_27 = arith.constant 1.000000e+00 : f32
    %94 = vector.broadcast %cst_27 : f32 to vector<2x64xf32>
    %95 = arith.addf %94, %93 : vector<2x64xf32>
    %96 = arith.divf %94, %95 : vector<2x64xf32>
    %97 = vector.extract_strided_slice %96 {offsets = [0, 0], sizes = [2, 32], strides = [1, 1]} : vector<2x64xf32> to vector<2x32xf32>
    %98 = vector.extract_strided_slice %96 {offsets = [0, 32], sizes = [2, 32], strides = [1, 1]} : vector<2x64xf32> to vector<2x32xf32>
    %99 = vector.extract_strided_slice %86 {offsets = [0, 64], sizes = [2, 32], strides = [1, 1]} : vector<2x96xf32> to vector<2x32xf32>
    %100 = vector.extract_strided_slice %88 {offsets = [0, 64], sizes = [2, 32], strides = [1, 1]} : vector<2x96xf32> to vector<2x32xf32>
    %101 = arith.addf %100, %5 : vector<2x32xf32>
    %102 = arith.mulf %97, %101 : vector<2x32xf32>
    %103 = arith.addf %99, %102 : vector<2x32xf32>
    %104 = math.tanh %103 : vector<2x32xf32>
    %cst_28 = arith.constant 1.000000e+00 : f32
    %105 = vector.broadcast %cst_28 : f32 to vector<2x32xf32>
    %106 = arith.subf %105, %98 : vector<2x32xf32>
    %107 = arith.mulf %106, %104 : vector<2x32xf32>
    %108 = arith.mulf %98, %85 : vector<2x32xf32>
    %109 = arith.addf %107, %108 : vector<2x32xf32>
    %c6_29 = arith.constant 6 : index
    %110 = memref.load %arg1[%c6_29] : memref<8xf32, #tpu.memory_space<smem>>
    %c5 = arith.constant 5 : index
    %111 = memref.load %arg1[%c5] : memref<8xf32, #tpu.memory_space<smem>>
    %112 = arith.subf %111, %110 : f32
    %113 = arith.truncf %109 : vector<2x32xf32> to vector<2x32xbf16>
    %cst_30 = arith.constant dense<0.000000e+00> : vector<2x32xf32>
    %114 = tpu.matmul %113, %2, %cst_30 {dimension_numbers = #tpu.dot_dimension_numbers<[1], [0], [0], [1], [0, 0, 1, 1], [], []>} : vector<2x32xbf16>, vector<32x32xbf16>, vector<2x32xf32> -> vector<2x32xf32>
    %115 = arith.addf %114, %8 : vector<2x32xf32>
    %116 = math.tanh %115 : vector<2x32xf32>
    %117 = vector.broadcast %112 : f32 to vector<2x32xf32>
    %118 = arith.mulf %117, %116 : vector<2x32xf32>
    %cst_31 = arith.constant 0.333333343 : f32
    %119 = vector.broadcast %cst_31 : f32 to vector<2x32xf32>
    %120 = arith.mulf %118, %119 : vector<2x32xf32>
    %121 = arith.addf %109, %120 : vector<2x32xf32>
    %122 = arith.truncf %121 : vector<2x32xf32> to vector<2x32xbf16>
    %cst_32 = arith.constant dense<0.000000e+00> : vector<2x32xf32>
    %123 = tpu.matmul %122, %2, %cst_32 {dimension_numbers = #tpu.dot_dimension_numbers<[1], [0], [0], [1], [0, 0, 1, 1], [], []>} : vector<2x32xbf16>, vector<32x32xbf16>, vector<2x32xf32> -> vector<2x32xf32>
    %124 = arith.addf %123, %8 : vector<2x32xf32>
    %125 = math.tanh %124 : vector<2x32xf32>
    %cst_33 = arith.constant 0.333333343 : f32
    %126 = vector.broadcast %cst_33 : f32 to vector<2x32xf32>
    %127 = arith.mulf %116, %126 : vector<2x32xf32>
    %128 = arith.subf %125, %127 : vector<2x32xf32>
    %129 = vector.broadcast %112 : f32 to vector<2x32xf32>
    %130 = arith.mulf %129, %128 : vector<2x32xf32>
    %131 = arith.addf %109, %130 : vector<2x32xf32>
    %132 = arith.truncf %131 : vector<2x32xf32> to vector<2x32xbf16>
    %cst_34 = arith.constant dense<0.000000e+00> : vector<2x32xf32>
    %133 = tpu.matmul %132, %2, %cst_34 {dimension_numbers = #tpu.dot_dimension_numbers<[1], [0], [0], [1], [0, 0, 1, 1], [], []>} : vector<2x32xbf16>, vector<32x32xbf16>, vector<2x32xf32> -> vector<2x32xf32>
    %134 = arith.addf %133, %8 : vector<2x32xf32>
    %135 = math.tanh %134 : vector<2x32xf32>
    %136 = arith.subf %116, %125 : vector<2x32xf32>
    %137 = arith.addf %136, %135 : vector<2x32xf32>
    %138 = vector.broadcast %112 : f32 to vector<2x32xf32>
    %139 = arith.mulf %138, %137 : vector<2x32xf32>
    %140 = arith.addf %109, %139 : vector<2x32xf32>
    %141 = arith.truncf %140 : vector<2x32xf32> to vector<2x32xbf16>
    %cst_35 = arith.constant dense<0.000000e+00> : vector<2x32xf32>
    %142 = tpu.matmul %141, %2, %cst_35 {dimension_numbers = #tpu.dot_dimension_numbers<[1], [0], [0], [1], [0, 0, 1, 1], [], []>} : vector<2x32xbf16>, vector<32x32xbf16>, vector<2x32xf32> -> vector<2x32xf32>
    %143 = arith.addf %142, %8 : vector<2x32xf32>
    %144 = math.tanh %143 : vector<2x32xf32>
    %145 = arith.addf %125, %135 : vector<2x32xf32>
    %cst_36 = arith.constant 3.000000e+00 : f32
    %146 = vector.broadcast %cst_36 : f32 to vector<2x32xf32>
    %147 = arith.mulf %146, %145 : vector<2x32xf32>
    %148 = arith.addf %116, %147 : vector<2x32xf32>
    %149 = arith.addf %148, %144 : vector<2x32xf32>
    %150 = vector.broadcast %112 : f32 to vector<2x32xf32>
    %151 = arith.mulf %149, %150 : vector<2x32xf32>
    %cst_37 = arith.constant 1.250000e-01 : f32
    %152 = vector.broadcast %cst_37 : f32 to vector<2x32xf32>
    %153 = arith.mulf %151, %152 : vector<2x32xf32>
    %154 = arith.addf %109, %153 : vector<2x32xf32>
    %155 = vector.extract_strided_slice %15 {offsets = [4, 0], sizes = [2, 96], strides = [1, 1]} : vector<16x96xf32> to vector<2x96xf32>
    %156 = arith.truncf %154 : vector<2x32xf32> to vector<2x32xbf16>
    %cst_38 = arith.constant dense<0.000000e+00> : vector<2x96xf32>
    %157 = tpu.matmul %156, %1, %cst_38 {dimension_numbers = #tpu.dot_dimension_numbers<[1], [0], [0], [1], [0, 0, 1, 1], [], []>} : vector<2x32xbf16>, vector<32x96xbf16>, vector<2x96xf32> -> vector<2x96xf32>
    %158 = vector.extract_strided_slice %155 {offsets = [0, 0], sizes = [2, 64], strides = [1, 1]} : vector<2x96xf32> to vector<2x64xf32>
    %159 = vector.extract_strided_slice %157 {offsets = [0, 0], sizes = [2, 64], strides = [1, 1]} : vector<2x96xf32> to vector<2x64xf32>
    %160 = arith.addf %158, %159 : vector<2x64xf32>
    %161 = arith.negf %160 : vector<2x64xf32>
    %162 = math.exp %161 : vector<2x64xf32>
    %cst_39 = arith.constant 1.000000e+00 : f32
    %163 = vector.broadcast %cst_39 : f32 to vector<2x64xf32>
    %164 = arith.addf %163, %162 : vector<2x64xf32>
    %165 = arith.divf %163, %164 : vector<2x64xf32>
    %166 = vector.extract_strided_slice %165 {offsets = [0, 0], sizes = [2, 32], strides = [1, 1]} : vector<2x64xf32> to vector<2x32xf32>
    %167 = vector.extract_strided_slice %165 {offsets = [0, 32], sizes = [2, 32], strides = [1, 1]} : vector<2x64xf32> to vector<2x32xf32>
    %168 = vector.extract_strided_slice %155 {offsets = [0, 64], sizes = [2, 32], strides = [1, 1]} : vector<2x96xf32> to vector<2x32xf32>
    %169 = vector.extract_strided_slice %157 {offsets = [0, 64], sizes = [2, 32], strides = [1, 1]} : vector<2x96xf32> to vector<2x32xf32>
    %170 = arith.addf %169, %5 : vector<2x32xf32>
    %171 = arith.mulf %166, %170 : vector<2x32xf32>
    %172 = arith.addf %168, %171 : vector<2x32xf32>
    %173 = math.tanh %172 : vector<2x32xf32>
    %cst_40 = arith.constant 1.000000e+00 : f32
    %174 = vector.broadcast %cst_40 : f32 to vector<2x32xf32>
    %175 = arith.subf %174, %167 : vector<2x32xf32>
    %176 = arith.mulf %175, %173 : vector<2x32xf32>
    %177 = arith.mulf %167, %154 : vector<2x32xf32>
    %178 = arith.addf %176, %177 : vector<2x32xf32>
    %c5_41 = arith.constant 5 : index
    %179 = memref.load %arg1[%c5_41] : memref<8xf32, #tpu.memory_space<smem>>
    %c4 = arith.constant 4 : index
    %180 = memref.load %arg1[%c4] : memref<8xf32, #tpu.memory_space<smem>>
    %181 = arith.subf %180, %179 : f32
    %182 = arith.truncf %178 : vector<2x32xf32> to vector<2x32xbf16>
    %cst_42 = arith.constant dense<0.000000e+00> : vector<2x32xf32>
    %183 = tpu.matmul %182, %2, %cst_42 {dimension_numbers = #tpu.dot_dimension_numbers<[1], [0], [0], [1], [0, 0, 1, 1], [], []>} : vector<2x32xbf16>, vector<32x32xbf16>, vector<2x32xf32> -> vector<2x32xf32>
    %184 = arith.addf %183, %8 : vector<2x32xf32>
    %185 = math.tanh %184 : vector<2x32xf32>
    %186 = vector.broadcast %181 : f32 to vector<2x32xf32>
    %187 = arith.mulf %186, %185 : vector<2x32xf32>
    %cst_43 = arith.constant 0.333333343 : f32
    %188 = vector.broadcast %cst_43 : f32 to vector<2x32xf32>
    %189 = arith.mulf %187, %188 : vector<2x32xf32>
    %190 = arith.addf %178, %189 : vector<2x32xf32>
    %191 = arith.truncf %190 : vector<2x32xf32> to vector<2x32xbf16>
    %cst_44 = arith.constant dense<0.000000e+00> : vector<2x32xf32>
    %192 = tpu.matmul %191, %2, %cst_44 {dimension_numbers = #tpu.dot_dimension_numbers<[1], [0], [0], [1], [0, 0, 1, 1], [], []>} : vector<2x32xbf16>, vector<32x32xbf16>, vector<2x32xf32> -> vector<2x32xf32>
    %193 = arith.addf %192, %8 : vector<2x32xf32>
    %194 = math.tanh %193 : vector<2x32xf32>
    %cst_45 = arith.constant 0.333333343 : f32
    %195 = vector.broadcast %cst_45 : f32 to vector<2x32xf32>
    %196 = arith.mulf %185, %195 : vector<2x32xf32>
    %197 = arith.subf %194, %196 : vector<2x32xf32>
    %198 = vector.broadcast %181 : f32 to vector<2x32xf32>
    %199 = arith.mulf %198, %197 : vector<2x32xf32>
    %200 = arith.addf %178, %199 : vector<2x32xf32>
    %201 = arith.truncf %200 : vector<2x32xf32> to vector<2x32xbf16>
    %cst_46 = arith.constant dense<0.000000e+00> : vector<2x32xf32>
    %202 = tpu.matmul %201, %2, %cst_46 {dimension_numbers = #tpu.dot_dimension_numbers<[1], [0], [0], [1], [0, 0, 1, 1], [], []>} : vector<2x32xbf16>, vector<32x32xbf16>, vector<2x32xf32> -> vector<2x32xf32>
    %203 = arith.addf %202, %8 : vector<2x32xf32>
    %204 = math.tanh %203 : vector<2x32xf32>
    %205 = arith.subf %185, %194 : vector<2x32xf32>
    %206 = arith.addf %205, %204 : vector<2x32xf32>
    %207 = vector.broadcast %181 : f32 to vector<2x32xf32>
    %208 = arith.mulf %207, %206 : vector<2x32xf32>
    %209 = arith.addf %178, %208 : vector<2x32xf32>
    %210 = arith.truncf %209 : vector<2x32xf32> to vector<2x32xbf16>
    %cst_47 = arith.constant dense<0.000000e+00> : vector<2x32xf32>
    %211 = tpu.matmul %210, %2, %cst_47 {dimension_numbers = #tpu.dot_dimension_numbers<[1], [0], [0], [1], [0, 0, 1, 1], [], []>} : vector<2x32xbf16>, vector<32x32xbf16>, vector<2x32xf32> -> vector<2x32xf32>
    %212 = arith.addf %211, %8 : vector<2x32xf32>
    %213 = math.tanh %212 : vector<2x32xf32>
    %214 = arith.addf %194, %204 : vector<2x32xf32>
    %cst_48 = arith.constant 3.000000e+00 : f32
    %215 = vector.broadcast %cst_48 : f32 to vector<2x32xf32>
    %216 = arith.mulf %215, %214 : vector<2x32xf32>
    %217 = arith.addf %185, %216 : vector<2x32xf32>
    %218 = arith.addf %217, %213 : vector<2x32xf32>
    %219 = vector.broadcast %181 : f32 to vector<2x32xf32>
    %220 = arith.mulf %218, %219 : vector<2x32xf32>
    %cst_49 = arith.constant 1.250000e-01 : f32
    %221 = vector.broadcast %cst_49 : f32 to vector<2x32xf32>
    %222 = arith.mulf %220, %221 : vector<2x32xf32>
    %223 = arith.addf %178, %222 : vector<2x32xf32>
    %224 = vector.extract_strided_slice %15 {offsets = [6, 0], sizes = [2, 96], strides = [1, 1]} : vector<16x96xf32> to vector<2x96xf32>
    %225 = arith.truncf %223 : vector<2x32xf32> to vector<2x32xbf16>
    %cst_50 = arith.constant dense<0.000000e+00> : vector<2x96xf32>
    %226 = tpu.matmul %225, %1, %cst_50 {dimension_numbers = #tpu.dot_dimension_numbers<[1], [0], [0], [1], [0, 0, 1, 1], [], []>} : vector<2x32xbf16>, vector<32x96xbf16>, vector<2x96xf32> -> vector<2x96xf32>
    %227 = vector.extract_strided_slice %224 {offsets = [0, 0], sizes = [2, 64], strides = [1, 1]} : vector<2x96xf32> to vector<2x64xf32>
    %228 = vector.extract_strided_slice %226 {offsets = [0, 0], sizes = [2, 64], strides = [1, 1]} : vector<2x96xf32> to vector<2x64xf32>
    %229 = arith.addf %227, %228 : vector<2x64xf32>
    %230 = arith.negf %229 : vector<2x64xf32>
    %231 = math.exp %230 : vector<2x64xf32>
    %cst_51 = arith.constant 1.000000e+00 : f32
    %232 = vector.broadcast %cst_51 : f32 to vector<2x64xf32>
    %233 = arith.addf %232, %231 : vector<2x64xf32>
    %234 = arith.divf %232, %233 : vector<2x64xf32>
    %235 = vector.extract_strided_slice %234 {offsets = [0, 0], sizes = [2, 32], strides = [1, 1]} : vector<2x64xf32> to vector<2x32xf32>
    %236 = vector.extract_strided_slice %234 {offsets = [0, 32], sizes = [2, 32], strides = [1, 1]} : vector<2x64xf32> to vector<2x32xf32>
    %237 = vector.extract_strided_slice %224 {offsets = [0, 64], sizes = [2, 32], strides = [1, 1]} : vector<2x96xf32> to vector<2x32xf32>
    %238 = vector.extract_strided_slice %226 {offsets = [0, 64], sizes = [2, 32], strides = [1, 1]} : vector<2x96xf32> to vector<2x32xf32>
    %239 = arith.addf %238, %5 : vector<2x32xf32>
    %240 = arith.mulf %235, %239 : vector<2x32xf32>
    %241 = arith.addf %237, %240 : vector<2x32xf32>
    %242 = math.tanh %241 : vector<2x32xf32>
    %cst_52 = arith.constant 1.000000e+00 : f32
    %243 = vector.broadcast %cst_52 : f32 to vector<2x32xf32>
    %244 = arith.subf %243, %236 : vector<2x32xf32>
    %245 = arith.mulf %244, %242 : vector<2x32xf32>
    %246 = arith.mulf %236, %223 : vector<2x32xf32>
    %247 = arith.addf %245, %246 : vector<2x32xf32>
    %c4_53 = arith.constant 4 : index
    %248 = memref.load %arg1[%c4_53] : memref<8xf32, #tpu.memory_space<smem>>
    %c3 = arith.constant 3 : index
    %249 = memref.load %arg1[%c3] : memref<8xf32, #tpu.memory_space<smem>>
    %250 = arith.subf %249, %248 : f32
    %251 = arith.truncf %247 : vector<2x32xf32> to vector<2x32xbf16>
    %cst_54 = arith.constant dense<0.000000e+00> : vector<2x32xf32>
    %252 = tpu.matmul %251, %2, %cst_54 {dimension_numbers = #tpu.dot_dimension_numbers<[1], [0], [0], [1], [0, 0, 1, 1], [], []>} : vector<2x32xbf16>, vector<32x32xbf16>, vector<2x32xf32> -> vector<2x32xf32>
    %253 = arith.addf %252, %8 : vector<2x32xf32>
    %254 = math.tanh %253 : vector<2x32xf32>
    %255 = vector.broadcast %250 : f32 to vector<2x32xf32>
    %256 = arith.mulf %255, %254 : vector<2x32xf32>
    %cst_55 = arith.constant 0.333333343 : f32
    %257 = vector.broadcast %cst_55 : f32 to vector<2x32xf32>
    %258 = arith.mulf %256, %257 : vector<2x32xf32>
    %259 = arith.addf %247, %258 : vector<2x32xf32>
    %260 = arith.truncf %259 : vector<2x32xf32> to vector<2x32xbf16>
    %cst_56 = arith.constant dense<0.000000e+00> : vector<2x32xf32>
    %261 = tpu.matmul %260, %2, %cst_56 {dimension_numbers = #tpu.dot_dimension_numbers<[1], [0], [0], [1], [0, 0, 1, 1], [], []>} : vector<2x32xbf16>, vector<32x32xbf16>, vector<2x32xf32> -> vector<2x32xf32>
    %262 = arith.addf %261, %8 : vector<2x32xf32>
    %263 = math.tanh %262 : vector<2x32xf32>
    %cst_57 = arith.constant 0.333333343 : f32
    %264 = vector.broadcast %cst_57 : f32 to vector<2x32xf32>
    %265 = arith.mulf %254, %264 : vector<2x32xf32>
    %266 = arith.subf %263, %265 : vector<2x32xf32>
    %267 = vector.broadcast %250 : f32 to vector<2x32xf32>
    %268 = arith.mulf %267, %266 : vector<2x32xf32>
    %269 = arith.addf %247, %268 : vector<2x32xf32>
    %270 = arith.truncf %269 : vector<2x32xf32> to vector<2x32xbf16>
    %cst_58 = arith.constant dense<0.000000e+00> : vector<2x32xf32>
    %271 = tpu.matmul %270, %2, %cst_58 {dimension_numbers = #tpu.dot_dimension_numbers<[1], [0], [0], [1], [0, 0, 1, 1], [], []>} : vector<2x32xbf16>, vector<32x32xbf16>, vector<2x32xf32> -> vector<2x32xf32>
    %272 = arith.addf %271, %8 : vector<2x32xf32>
    %273 = math.tanh %272 : vector<2x32xf32>
    %274 = arith.subf %254, %263 : vector<2x32xf32>
    %275 = arith.addf %274, %273 : vector<2x32xf32>
    %276 = vector.broadcast %250 : f32 to vector<2x32xf32>
    %277 = arith.mulf %276, %275 : vector<2x32xf32>
    %278 = arith.addf %247, %277 : vector<2x32xf32>
    %279 = arith.truncf %278 : vector<2x32xf32> to vector<2x32xbf16>
    %cst_59 = arith.constant dense<0.000000e+00> : vector<2x32xf32>
    %280 = tpu.matmul %279, %2, %cst_59 {dimension_numbers = #tpu.dot_dimension_numbers<[1], [0], [0], [1], [0, 0, 1, 1], [], []>} : vector<2x32xbf16>, vector<32x32xbf16>, vector<2x32xf32> -> vector<2x32xf32>
    %281 = arith.addf %280, %8 : vector<2x32xf32>
    %282 = math.tanh %281 : vector<2x32xf32>
    %283 = arith.addf %263, %273 : vector<2x32xf32>
    %cst_60 = arith.constant 3.000000e+00 : f32
    %284 = vector.broadcast %cst_60 : f32 to vector<2x32xf32>
    %285 = arith.mulf %284, %283 : vector<2x32xf32>
    %286 = arith.addf %254, %285 : vector<2x32xf32>
    %287 = arith.addf %286, %282 : vector<2x32xf32>
    %288 = vector.broadcast %250 : f32 to vector<2x32xf32>
    %289 = arith.mulf %287, %288 : vector<2x32xf32>
    %cst_61 = arith.constant 1.250000e-01 : f32
    %290 = vector.broadcast %cst_61 : f32 to vector<2x32xf32>
    %291 = arith.mulf %289, %290 : vector<2x32xf32>
    %292 = arith.addf %247, %291 : vector<2x32xf32>
    %293 = vector.extract_strided_slice %15 {offsets = [8, 0], sizes = [2, 96], strides = [1, 1]} : vector<16x96xf32> to vector<2x96xf32>
    %294 = arith.truncf %292 : vector<2x32xf32> to vector<2x32xbf16>
    %cst_62 = arith.constant dense<0.000000e+00> : vector<2x96xf32>
    %295 = tpu.matmul %294, %1, %cst_62 {dimension_numbers = #tpu.dot_dimension_numbers<[1], [0], [0], [1], [0, 0, 1, 1], [], []>} : vector<2x32xbf16>, vector<32x96xbf16>, vector<2x96xf32> -> vector<2x96xf32>
    %296 = vector.extract_strided_slice %293 {offsets = [0, 0], sizes = [2, 64], strides = [1, 1]} : vector<2x96xf32> to vector<2x64xf32>
    %297 = vector.extract_strided_slice %295 {offsets = [0, 0], sizes = [2, 64], strides = [1, 1]} : vector<2x96xf32> to vector<2x64xf32>
    %298 = arith.addf %296, %297 : vector<2x64xf32>
    %299 = arith.negf %298 : vector<2x64xf32>
    %300 = math.exp %299 : vector<2x64xf32>
    %cst_63 = arith.constant 1.000000e+00 : f32
    %301 = vector.broadcast %cst_63 : f32 to vector<2x64xf32>
    %302 = arith.addf %301, %300 : vector<2x64xf32>
    %303 = arith.divf %301, %302 : vector<2x64xf32>
    %304 = vector.extract_strided_slice %303 {offsets = [0, 0], sizes = [2, 32], strides = [1, 1]} : vector<2x64xf32> to vector<2x32xf32>
    %305 = vector.extract_strided_slice %303 {offsets = [0, 32], sizes = [2, 32], strides = [1, 1]} : vector<2x64xf32> to vector<2x32xf32>
    %306 = vector.extract_strided_slice %293 {offsets = [0, 64], sizes = [2, 32], strides = [1, 1]} : vector<2x96xf32> to vector<2x32xf32>
    %307 = vector.extract_strided_slice %295 {offsets = [0, 64], sizes = [2, 32], strides = [1, 1]} : vector<2x96xf32> to vector<2x32xf32>
    %308 = arith.addf %307, %5 : vector<2x32xf32>
    %309 = arith.mulf %304, %308 : vector<2x32xf32>
    %310 = arith.addf %306, %309 : vector<2x32xf32>
    %311 = math.tanh %310 : vector<2x32xf32>
    %cst_64 = arith.constant 1.000000e+00 : f32
    %312 = vector.broadcast %cst_64 : f32 to vector<2x32xf32>
    %313 = arith.subf %312, %305 : vector<2x32xf32>
    %314 = arith.mulf %313, %311 : vector<2x32xf32>
    %315 = arith.mulf %305, %292 : vector<2x32xf32>
    %316 = arith.addf %314, %315 : vector<2x32xf32>
    %c3_65 = arith.constant 3 : index
    %317 = memref.load %arg1[%c3_65] : memref<8xf32, #tpu.memory_space<smem>>
    %c2 = arith.constant 2 : index
    %318 = memref.load %arg1[%c2] : memref<8xf32, #tpu.memory_space<smem>>
    %319 = arith.subf %318, %317 : f32
    %320 = arith.truncf %316 : vector<2x32xf32> to vector<2x32xbf16>
    %cst_66 = arith.constant dense<0.000000e+00> : vector<2x32xf32>
    %321 = tpu.matmul %320, %2, %cst_66 {dimension_numbers = #tpu.dot_dimension_numbers<[1], [0], [0], [1], [0, 0, 1, 1], [], []>} : vector<2x32xbf16>, vector<32x32xbf16>, vector<2x32xf32> -> vector<2x32xf32>
    %322 = arith.addf %321, %8 : vector<2x32xf32>
    %323 = math.tanh %322 : vector<2x32xf32>
    %324 = vector.broadcast %319 : f32 to vector<2x32xf32>
    %325 = arith.mulf %324, %323 : vector<2x32xf32>
    %cst_67 = arith.constant 0.333333343 : f32
    %326 = vector.broadcast %cst_67 : f32 to vector<2x32xf32>
    %327 = arith.mulf %325, %326 : vector<2x32xf32>
    %328 = arith.addf %316, %327 : vector<2x32xf32>
    %329 = arith.truncf %328 : vector<2x32xf32> to vector<2x32xbf16>
    %cst_68 = arith.constant dense<0.000000e+00> : vector<2x32xf32>
    %330 = tpu.matmul %329, %2, %cst_68 {dimension_numbers = #tpu.dot_dimension_numbers<[1], [0], [0], [1], [0, 0, 1, 1], [], []>} : vector<2x32xbf16>, vector<32x32xbf16>, vector<2x32xf32> -> vector<2x32xf32>
    %331 = arith.addf %330, %8 : vector<2x32xf32>
    %332 = math.tanh %331 : vector<2x32xf32>
    %cst_69 = arith.constant 0.333333343 : f32
    %333 = vector.broadcast %cst_69 : f32 to vector<2x32xf32>
    %334 = arith.mulf %323, %333 : vector<2x32xf32>
    %335 = arith.subf %332, %334 : vector<2x32xf32>
    %336 = vector.broadcast %319 : f32 to vector<2x32xf32>
    %337 = arith.mulf %336, %335 : vector<2x32xf32>
    %338 = arith.addf %316, %337 : vector<2x32xf32>
    %339 = arith.truncf %338 : vector<2x32xf32> to vector<2x32xbf16>
    %cst_70 = arith.constant dense<0.000000e+00> : vector<2x32xf32>
    %340 = tpu.matmul %339, %2, %cst_70 {dimension_numbers = #tpu.dot_dimension_numbers<[1], [0], [0], [1], [0, 0, 1, 1], [], []>} : vector<2x32xbf16>, vector<32x32xbf16>, vector<2x32xf32> -> vector<2x32xf32>
    %341 = arith.addf %340, %8 : vector<2x32xf32>
    %342 = math.tanh %341 : vector<2x32xf32>
    %343 = arith.subf %323, %332 : vector<2x32xf32>
    %344 = arith.addf %343, %342 : vector<2x32xf32>
    %345 = vector.broadcast %319 : f32 to vector<2x32xf32>
    %346 = arith.mulf %345, %344 : vector<2x32xf32>
    %347 = arith.addf %316, %346 : vector<2x32xf32>
    %348 = arith.truncf %347 : vector<2x32xf32> to vector<2x32xbf16>
    %cst_71 = arith.constant dense<0.000000e+00> : vector<2x32xf32>
    %349 = tpu.matmul %348, %2, %cst_71 {dimension_numbers = #tpu.dot_dimension_numbers<[1], [0], [0], [1], [0, 0, 1, 1], [], []>} : vector<2x32xbf16>, vector<32x32xbf16>, vector<2x32xf32> -> vector<2x32xf32>
    %350 = arith.addf %349, %8 : vector<2x32xf32>
    %351 = math.tanh %350 : vector<2x32xf32>
    %352 = arith.addf %332, %342 : vector<2x32xf32>
    %cst_72 = arith.constant 3.000000e+00 : f32
    %353 = vector.broadcast %cst_72 : f32 to vector<2x32xf32>
    %354 = arith.mulf %353, %352 : vector<2x32xf32>
    %355 = arith.addf %323, %354 : vector<2x32xf32>
    %356 = arith.addf %355, %351 : vector<2x32xf32>
    %357 = vector.broadcast %319 : f32 to vector<2x32xf32>
    %358 = arith.mulf %356, %357 : vector<2x32xf32>
    %cst_73 = arith.constant 1.250000e-01 : f32
    %359 = vector.broadcast %cst_73 : f32 to vector<2x32xf32>
    %360 = arith.mulf %358, %359 : vector<2x32xf32>
    %361 = arith.addf %316, %360 : vector<2x32xf32>
    %362 = vector.extract_strided_slice %15 {offsets = [10, 0], sizes = [2, 96], strides = [1, 1]} : vector<16x96xf32> to vector<2x96xf32>
    %363 = arith.truncf %361 : vector<2x32xf32> to vector<2x32xbf16>
    %cst_74 = arith.constant dense<0.000000e+00> : vector<2x96xf32>
    %364 = tpu.matmul %363, %1, %cst_74 {dimension_numbers = #tpu.dot_dimension_numbers<[1], [0], [0], [1], [0, 0, 1, 1], [], []>} : vector<2x32xbf16>, vector<32x96xbf16>, vector<2x96xf32> -> vector<2x96xf32>
    %365 = vector.extract_strided_slice %362 {offsets = [0, 0], sizes = [2, 64], strides = [1, 1]} : vector<2x96xf32> to vector<2x64xf32>
    %366 = vector.extract_strided_slice %364 {offsets = [0, 0], sizes = [2, 64], strides = [1, 1]} : vector<2x96xf32> to vector<2x64xf32>
    %367 = arith.addf %365, %366 : vector<2x64xf32>
    %368 = arith.negf %367 : vector<2x64xf32>
    %369 = math.exp %368 : vector<2x64xf32>
    %cst_75 = arith.constant 1.000000e+00 : f32
    %370 = vector.broadcast %cst_75 : f32 to vector<2x64xf32>
    %371 = arith.addf %370, %369 : vector<2x64xf32>
    %372 = arith.divf %370, %371 : vector<2x64xf32>
    %373 = vector.extract_strided_slice %372 {offsets = [0, 0], sizes = [2, 32], strides = [1, 1]} : vector<2x64xf32> to vector<2x32xf32>
    %374 = vector.extract_strided_slice %372 {offsets = [0, 32], sizes = [2, 32], strides = [1, 1]} : vector<2x64xf32> to vector<2x32xf32>
    %375 = vector.extract_strided_slice %362 {offsets = [0, 64], sizes = [2, 32], strides = [1, 1]} : vector<2x96xf32> to vector<2x32xf32>
    %376 = vector.extract_strided_slice %364 {offsets = [0, 64], sizes = [2, 32], strides = [1, 1]} : vector<2x96xf32> to vector<2x32xf32>
    %377 = arith.addf %376, %5 : vector<2x32xf32>
    %378 = arith.mulf %373, %377 : vector<2x32xf32>
    %379 = arith.addf %375, %378 : vector<2x32xf32>
    %380 = math.tanh %379 : vector<2x32xf32>
    %cst_76 = arith.constant 1.000000e+00 : f32
    %381 = vector.broadcast %cst_76 : f32 to vector<2x32xf32>
    %382 = arith.subf %381, %374 : vector<2x32xf32>
    %383 = arith.mulf %382, %380 : vector<2x32xf32>
    %384 = arith.mulf %374, %361 : vector<2x32xf32>
    %385 = arith.addf %383, %384 : vector<2x32xf32>
    %c2_77 = arith.constant 2 : index
    %386 = memref.load %arg1[%c2_77] : memref<8xf32, #tpu.memory_space<smem>>
    %c1 = arith.constant 1 : index
    %387 = memref.load %arg1[%c1] : memref<8xf32, #tpu.memory_space<smem>>
    %388 = arith.subf %387, %386 : f32
    %389 = arith.truncf %385 : vector<2x32xf32> to vector<2x32xbf16>
    %cst_78 = arith.constant dense<0.000000e+00> : vector<2x32xf32>
    %390 = tpu.matmul %389, %2, %cst_78 {dimension_numbers = #tpu.dot_dimension_numbers<[1], [0], [0], [1], [0, 0, 1, 1], [], []>} : vector<2x32xbf16>, vector<32x32xbf16>, vector<2x32xf32> -> vector<2x32xf32>
    %391 = arith.addf %390, %8 : vector<2x32xf32>
    %392 = math.tanh %391 : vector<2x32xf32>
    %393 = vector.broadcast %388 : f32 to vector<2x32xf32>
    %394 = arith.mulf %393, %392 : vector<2x32xf32>
    %cst_79 = arith.constant 0.333333343 : f32
    %395 = vector.broadcast %cst_79 : f32 to vector<2x32xf32>
    %396 = arith.mulf %394, %395 : vector<2x32xf32>
    %397 = arith.addf %385, %396 : vector<2x32xf32>
    %398 = arith.truncf %397 : vector<2x32xf32> to vector<2x32xbf16>
    %cst_80 = arith.constant dense<0.000000e+00> : vector<2x32xf32>
    %399 = tpu.matmul %398, %2, %cst_80 {dimension_numbers = #tpu.dot_dimension_numbers<[1], [0], [0], [1], [0, 0, 1, 1], [], []>} : vector<2x32xbf16>, vector<32x32xbf16>, vector<2x32xf32> -> vector<2x32xf32>
    %400 = arith.addf %399, %8 : vector<2x32xf32>
    %401 = math.tanh %400 : vector<2x32xf32>
    %cst_81 = arith.constant 0.333333343 : f32
    %402 = vector.broadcast %cst_81 : f32 to vector<2x32xf32>
    %403 = arith.mulf %392, %402 : vector<2x32xf32>
    %404 = arith.subf %401, %403 : vector<2x32xf32>
    %405 = vector.broadcast %388 : f32 to vector<2x32xf32>
    %406 = arith.mulf %405, %404 : vector<2x32xf32>
    %407 = arith.addf %385, %406 : vector<2x32xf32>
    %408 = arith.truncf %407 : vector<2x32xf32> to vector<2x32xbf16>
    %cst_82 = arith.constant dense<0.000000e+00> : vector<2x32xf32>
    %409 = tpu.matmul %408, %2, %cst_82 {dimension_numbers = #tpu.dot_dimension_numbers<[1], [0], [0], [1], [0, 0, 1, 1], [], []>} : vector<2x32xbf16>, vector<32x32xbf16>, vector<2x32xf32> -> vector<2x32xf32>
    %410 = arith.addf %409, %8 : vector<2x32xf32>
    %411 = math.tanh %410 : vector<2x32xf32>
    %412 = arith.subf %392, %401 : vector<2x32xf32>
    %413 = arith.addf %412, %411 : vector<2x32xf32>
    %414 = vector.broadcast %388 : f32 to vector<2x32xf32>
    %415 = arith.mulf %414, %413 : vector<2x32xf32>
    %416 = arith.addf %385, %415 : vector<2x32xf32>
    %417 = arith.truncf %416 : vector<2x32xf32> to vector<2x32xbf16>
    %cst_83 = arith.constant dense<0.000000e+00> : vector<2x32xf32>
    %418 = tpu.matmul %417, %2, %cst_83 {dimension_numbers = #tpu.dot_dimension_numbers<[1], [0], [0], [1], [0, 0, 1, 1], [], []>} : vector<2x32xbf16>, vector<32x32xbf16>, vector<2x32xf32> -> vector<2x32xf32>
    %419 = arith.addf %418, %8 : vector<2x32xf32>
    %420 = math.tanh %419 : vector<2x32xf32>
    %421 = arith.addf %401, %411 : vector<2x32xf32>
    %cst_84 = arith.constant 3.000000e+00 : f32
    %422 = vector.broadcast %cst_84 : f32 to vector<2x32xf32>
    %423 = arith.mulf %422, %421 : vector<2x32xf32>
    %424 = arith.addf %392, %423 : vector<2x32xf32>
    %425 = arith.addf %424, %420 : vector<2x32xf32>
    %426 = vector.broadcast %388 : f32 to vector<2x32xf32>
    %427 = arith.mulf %425, %426 : vector<2x32xf32>
    %cst_85 = arith.constant 1.250000e-01 : f32
    %428 = vector.broadcast %cst_85 : f32 to vector<2x32xf32>
    %429 = arith.mulf %427, %428 : vector<2x32xf32>
    %430 = arith.addf %385, %429 : vector<2x32xf32>
    %431 = vector.extract_strided_slice %15 {offsets = [12, 0], sizes = [2, 96], strides = [1, 1]} : vector<16x96xf32> to vector<2x96xf32>
    %432 = arith.truncf %430 : vector<2x32xf32> to vector<2x32xbf16>
    %cst_86 = arith.constant dense<0.000000e+00> : vector<2x96xf32>
    %433 = tpu.matmul %432, %1, %cst_86 {dimension_numbers = #tpu.dot_dimension_numbers<[1], [0], [0], [1], [0, 0, 1, 1], [], []>} : vector<2x32xbf16>, vector<32x96xbf16>, vector<2x96xf32> -> vector<2x96xf32>
    %434 = vector.extract_strided_slice %431 {offsets = [0, 0], sizes = [2, 64], strides = [1, 1]} : vector<2x96xf32> to vector<2x64xf32>
    %435 = vector.extract_strided_slice %433 {offsets = [0, 0], sizes = [2, 64], strides = [1, 1]} : vector<2x96xf32> to vector<2x64xf32>
    %436 = arith.addf %434, %435 : vector<2x64xf32>
    %437 = arith.negf %436 : vector<2x64xf32>
    %438 = math.exp %437 : vector<2x64xf32>
    %cst_87 = arith.constant 1.000000e+00 : f32
    %439 = vector.broadcast %cst_87 : f32 to vector<2x64xf32>
    %440 = arith.addf %439, %438 : vector<2x64xf32>
    %441 = arith.divf %439, %440 : vector<2x64xf32>
    %442 = vector.extract_strided_slice %441 {offsets = [0, 0], sizes = [2, 32], strides = [1, 1]} : vector<2x64xf32> to vector<2x32xf32>
    %443 = vector.extract_strided_slice %441 {offsets = [0, 32], sizes = [2, 32], strides = [1, 1]} : vector<2x64xf32> to vector<2x32xf32>
    %444 = vector.extract_strided_slice %431 {offsets = [0, 64], sizes = [2, 32], strides = [1, 1]} : vector<2x96xf32> to vector<2x32xf32>
    %445 = vector.extract_strided_slice %433 {offsets = [0, 64], sizes = [2, 32], strides = [1, 1]} : vector<2x96xf32> to vector<2x32xf32>
    %446 = arith.addf %445, %5 : vector<2x32xf32>
    %447 = arith.mulf %442, %446 : vector<2x32xf32>
    %448 = arith.addf %444, %447 : vector<2x32xf32>
    %449 = math.tanh %448 : vector<2x32xf32>
    %cst_88 = arith.constant 1.000000e+00 : f32
    %450 = vector.broadcast %cst_88 : f32 to vector<2x32xf32>
    %451 = arith.subf %450, %443 : vector<2x32xf32>
    %452 = arith.mulf %451, %449 : vector<2x32xf32>
    %453 = arith.mulf %443, %430 : vector<2x32xf32>
    %454 = arith.addf %452, %453 : vector<2x32xf32>
    %c1_89 = arith.constant 1 : index
    %455 = memref.load %arg1[%c1_89] : memref<8xf32, #tpu.memory_space<smem>>
    %c0_90 = arith.constant 0 : index
    %456 = memref.load %arg1[%c0_90] : memref<8xf32, #tpu.memory_space<smem>>
    %457 = arith.subf %456, %455 : f32
    %458 = arith.truncf %454 : vector<2x32xf32> to vector<2x32xbf16>
    %cst_91 = arith.constant dense<0.000000e+00> : vector<2x32xf32>
    %459 = tpu.matmul %458, %2, %cst_91 {dimension_numbers = #tpu.dot_dimension_numbers<[1], [0], [0], [1], [0, 0, 1, 1], [], []>} : vector<2x32xbf16>, vector<32x32xbf16>, vector<2x32xf32> -> vector<2x32xf32>
    %460 = arith.addf %459, %8 : vector<2x32xf32>
    %461 = math.tanh %460 : vector<2x32xf32>
    %462 = vector.broadcast %457 : f32 to vector<2x32xf32>
    %463 = arith.mulf %462, %461 : vector<2x32xf32>
    %cst_92 = arith.constant 0.333333343 : f32
    %464 = vector.broadcast %cst_92 : f32 to vector<2x32xf32>
    %465 = arith.mulf %463, %464 : vector<2x32xf32>
    %466 = arith.addf %454, %465 : vector<2x32xf32>
    %467 = arith.truncf %466 : vector<2x32xf32> to vector<2x32xbf16>
    %cst_93 = arith.constant dense<0.000000e+00> : vector<2x32xf32>
    %468 = tpu.matmul %467, %2, %cst_93 {dimension_numbers = #tpu.dot_dimension_numbers<[1], [0], [0], [1], [0, 0, 1, 1], [], []>} : vector<2x32xbf16>, vector<32x32xbf16>, vector<2x32xf32> -> vector<2x32xf32>
    %469 = arith.addf %468, %8 : vector<2x32xf32>
    %470 = math.tanh %469 : vector<2x32xf32>
    %cst_94 = arith.constant 0.333333343 : f32
    %471 = vector.broadcast %cst_94 : f32 to vector<2x32xf32>
    %472 = arith.mulf %461, %471 : vector<2x32xf32>
    %473 = arith.subf %470, %472 : vector<2x32xf32>
    %474 = vector.broadcast %457 : f32 to vector<2x32xf32>
    %475 = arith.mulf %474, %473 : vector<2x32xf32>
    %476 = arith.addf %454, %475 : vector<2x32xf32>
    %477 = arith.truncf %476 : vector<2x32xf32> to vector<2x32xbf16>
    %cst_95 = arith.constant dense<0.000000e+00> : vector<2x32xf32>
    %478 = tpu.matmul %477, %2, %cst_95 {dimension_numbers = #tpu.dot_dimension_numbers<[1], [0], [0], [1], [0, 0, 1, 1], [], []>} : vector<2x32xbf16>, vector<32x32xbf16>, vector<2x32xf32> -> vector<2x32xf32>
    %479 = arith.addf %478, %8 : vector<2x32xf32>
    %480 = math.tanh %479 : vector<2x32xf32>
    %481 = arith.subf %461, %470 : vector<2x32xf32>
    %482 = arith.addf %481, %480 : vector<2x32xf32>
    %483 = vector.broadcast %457 : f32 to vector<2x32xf32>
    %484 = arith.mulf %483, %482 : vector<2x32xf32>
    %485 = arith.addf %454, %484 : vector<2x32xf32>
    %486 = arith.truncf %485 : vector<2x32xf32> to vector<2x32xbf16>
    %cst_96 = arith.constant dense<0.000000e+00> : vector<2x32xf32>
    %487 = tpu.matmul %486, %2, %cst_96 {dimension_numbers = #tpu.dot_dimension_numbers<[1], [0], [0], [1], [0, 0, 1, 1], [], []>} : vector<2x32xbf16>, vector<32x32xbf16>, vector<2x32xf32> -> vector<2x32xf32>
    %488 = arith.addf %487, %8 : vector<2x32xf32>
    %489 = math.tanh %488 : vector<2x32xf32>
    %490 = arith.addf %470, %480 : vector<2x32xf32>
    %cst_97 = arith.constant 3.000000e+00 : f32
    %491 = vector.broadcast %cst_97 : f32 to vector<2x32xf32>
    %492 = arith.mulf %491, %490 : vector<2x32xf32>
    %493 = arith.addf %461, %492 : vector<2x32xf32>
    %494 = arith.addf %493, %489 : vector<2x32xf32>
    %495 = vector.broadcast %457 : f32 to vector<2x32xf32>
    %496 = arith.mulf %494, %495 : vector<2x32xf32>
    %cst_98 = arith.constant 1.250000e-01 : f32
    %497 = vector.broadcast %cst_98 : f32 to vector<2x32xf32>
    %498 = arith.mulf %496, %497 : vector<2x32xf32>
    %499 = arith.addf %454, %498 : vector<2x32xf32>
    %500 = vector.extract_strided_slice %15 {offsets = [14, 0], sizes = [2, 96], strides = [1, 1]} : vector<16x96xf32> to vector<2x96xf32>
    %501 = arith.truncf %499 : vector<2x32xf32> to vector<2x32xbf16>
    %cst_99 = arith.constant dense<0.000000e+00> : vector<2x96xf32>
    %502 = tpu.matmul %501, %1, %cst_99 {dimension_numbers = #tpu.dot_dimension_numbers<[1], [0], [0], [1], [0, 0, 1, 1], [], []>} : vector<2x32xbf16>, vector<32x96xbf16>, vector<2x96xf32> -> vector<2x96xf32>
    %503 = vector.extract_strided_slice %500 {offsets = [0, 0], sizes = [2, 64], strides = [1, 1]} : vector<2x96xf32> to vector<2x64xf32>
    %504 = vector.extract_strided_slice %502 {offsets = [0, 0], sizes = [2, 64], strides = [1, 1]} : vector<2x96xf32> to vector<2x64xf32>
    %505 = arith.addf %503, %504 : vector<2x64xf32>
    %506 = arith.negf %505 : vector<2x64xf32>
    %507 = math.exp %506 : vector<2x64xf32>
    %cst_100 = arith.constant 1.000000e+00 : f32
    %508 = vector.broadcast %cst_100 : f32 to vector<2x64xf32>
    %509 = arith.addf %508, %507 : vector<2x64xf32>
    %510 = arith.divf %508, %509 : vector<2x64xf32>
    %511 = vector.extract_strided_slice %510 {offsets = [0, 0], sizes = [2, 32], strides = [1, 1]} : vector<2x64xf32> to vector<2x32xf32>
    %512 = vector.extract_strided_slice %510 {offsets = [0, 32], sizes = [2, 32], strides = [1, 1]} : vector<2x64xf32> to vector<2x32xf32>
    %513 = vector.extract_strided_slice %500 {offsets = [0, 64], sizes = [2, 32], strides = [1, 1]} : vector<2x96xf32> to vector<2x32xf32>
    %514 = vector.extract_strided_slice %502 {offsets = [0, 64], sizes = [2, 32], strides = [1, 1]} : vector<2x96xf32> to vector<2x32xf32>
    %515 = arith.addf %514, %5 : vector<2x32xf32>
    %516 = arith.mulf %511, %515 : vector<2x32xf32>
    %517 = arith.addf %513, %516 : vector<2x32xf32>
    %518 = math.tanh %517 : vector<2x32xf32>
    %cst_101 = arith.constant 1.000000e+00 : f32
    %519 = vector.broadcast %cst_101 : f32 to vector<2x32xf32>
    %520 = arith.subf %519, %512 : vector<2x32xf32>
    %521 = arith.mulf %520, %518 : vector<2x32xf32>
    %522 = arith.mulf %512, %499 : vector<2x32xf32>
    %523 = arith.addf %521, %522 : vector<2x32xf32>
    %524 = arith.truncf %523 : vector<2x32xf32> to vector<2x32xbf16>
    %c0_102 = arith.constant 0 : index
    %c0_103 = arith.constant 0 : index
    %525 = vector.load %arg9[%c0_102, %c0_103] : memref<32x256xbf16, #tpu.memory_space<vmem>>, vector<32x256xbf16>
    %cst_104 = arith.constant dense<0.000000e+00> : vector<2x256xf32>
    %526 = tpu.matmul %524, %525, %cst_104 {dimension_numbers = #tpu.dot_dimension_numbers<[1], [0], [0], [1], [0, 0, 1, 1], [], []>} : vector<2x32xbf16>, vector<32x256xbf16>, vector<2x256xf32> -> vector<2x256xf32>
    %c0_105 = arith.constant 0 : index
    %c0_106 = arith.constant 0 : index
    %527 = vector.load %arg10[%c0_105, %c0_106] : memref<1x256xf32, #tpu.memory_space<vmem>>, vector<1x256xf32>
    %528 = vector.broadcast %527 : vector<1x256xf32> to vector<2x256xf32>
    %529 = arith.addf %526, %528 : vector<2x256xf32>
    %cst_107 = arith.constant 0.000000e+00 : f32
    %530 = vector.broadcast %cst_107 : f32 to vector<2x256xf32>
    %531 = arith.maximumf %529, %530 : vector<2x256xf32>
    %532 = arith.truncf %531 : vector<2x256xf32> to vector<2x256xbf16>
    %533 = vector.extract_strided_slice %532 {offsets = [0, 0], sizes = [2, 128], strides = [1, 1]} : vector<2x256xbf16> to vector<2x128xbf16>
    %c0_108 = arith.constant 0 : index
    %c0_109 = arith.constant 0 : index
    %534 = vector.load %arg11[%c0_108, %c0_109] : memref<128x32xbf16, #tpu.memory_space<vmem>>, vector<128x32xbf16>
    %cst_110 = arith.constant dense<0.000000e+00> : vector<2x32xf32>
    %535 = tpu.matmul %533, %534, %cst_110 {dimension_numbers = #tpu.dot_dimension_numbers<[1], [0], [0], [1], [0, 0, 1, 1], [], []>} : vector<2x128xbf16>, vector<128x32xbf16>, vector<2x32xf32> -> vector<2x32xf32>
    %c0_111 = arith.constant 0 : index
    %c0_112 = arith.constant 0 : index
    %536 = vector.load %arg12[%c0_111, %c0_112] : memref<1x32xf32, #tpu.memory_space<vmem>>, vector<1x32xf32>
    %537 = vector.broadcast %536 : vector<1x32xf32> to vector<2x32xf32>
    %538 = arith.addf %535, %537 : vector<2x32xf32>
    %539 = vector.extract_strided_slice %532 {offsets = [0, 128], sizes = [2, 128], strides = [1, 1]} : vector<2x256xbf16> to vector<2x128xbf16>
    %c0_113 = arith.constant 0 : index
    %c0_114 = arith.constant 0 : index
    %540 = vector.load %arg13[%c0_113, %c0_114] : memref<128x32xbf16, #tpu.memory_space<vmem>>, vector<128x32xbf16>
    %cst_115 = arith.constant dense<0.000000e+00> : vector<2x32xf32>
    %541 = tpu.matmul %539, %540, %cst_115 {dimension_numbers = #tpu.dot_dimension_numbers<[1], [0], [0], [1], [0, 0, 1, 1], [], []>} : vector<2x128xbf16>, vector<128x32xbf16>, vector<2x32xf32> -> vector<2x32xf32>
    %c0_116 = arith.constant 0 : index
    %c0_117 = arith.constant 0 : index
    %542 = vector.load %arg14[%c0_116, %c0_117] : memref<1x32xf32, #tpu.memory_space<vmem>>, vector<1x32xf32>
    %543 = vector.broadcast %542 : vector<1x32xf32> to vector<2x32xf32>
    %544 = arith.addf %541, %543 : vector<2x32xf32>
    %c0_118 = arith.constant 0 : index
    %c0_119 = arith.constant 0 : index
    %545 = vector.load %arg15[%c0_118, %c0_119] : memref<2x32xf32, #tpu.memory_space<vmem>>, vector<2x32xf32>
    tpu.vector_store %arg15[%c0_118, %c0_119], %538 {strides = array<i32>} : memref<2x32xf32, #tpu.memory_space<vmem>>, vector<2x32xf32>,
    %546 = arith.negf %544 : vector<2x32xf32>
    %547 = math.exp %546 : vector<2x32xf32>
    %cst_120 = arith.constant 1.000000e+00 : f32
    %548 = vector.broadcast %cst_120 : f32 to vector<2x32xf32>
    %549 = arith.addf %548, %547 : vector<2x32xf32>
    %550 = arith.divf %548, %549 : vector<2x32xf32>
    %cst_121 = arith.constant 0.899999976 : f32
    %551 = vector.broadcast %cst_121 : f32 to vector<2x32xf32>
    %552 = arith.mulf %551, %550 : vector<2x32xf32>
    %cst_122 = arith.constant 1.000000e-01 : f32
    %553 = vector.broadcast %cst_122 : f32 to vector<2x32xf32>
    %554 = arith.addf %553, %552 : vector<2x32xf32>
    %c0_123 = arith.constant 0 : index
    %c0_124 = arith.constant 0 : index
    %555 = vector.load %arg16[%c0_123, %c0_124] : memref<2x32xf32, #tpu.memory_space<vmem>>, vector<2x32xf32>
    tpu.vector_store %arg16[%c0_123, %c0_124], %554 {strides = array<i32>} : memref<2x32xf32, #tpu.memory_space<vmem>>, vector<2x32xf32>,
    return
  }
  func.func @transform_0(%arg0: i32) -> i32 {
    %c0_i32 = arith.constant 0 : i32
    %c0_i32_0 = arith.constant 0 : i32
    return %c0_i32 : i32
  }
  func.func @transform_1(%arg0: i32) -> (i32, i32, i32) {
    %c0_i32 = arith.constant 0 : i32
    %c0_i32_0 = arith.constant 0 : i32
    %c0_i32_1 = arith.constant 0 : i32
    return %arg0, %c0_i32, %c0_i32_0 : i32, i32, i32
  }
  func.func @transform_2(%arg0: i32) -> (i32, i32) {
    %c0_i32 = arith.constant 0 : i32
    %c0_i32_0 = arith.constant 0 : i32
    %c0_i32_1 = arith.constant 0 : i32
    return %c0_i32, %c0_i32_0 : i32, i32
  }
  func.func @transform_3(%arg0: i32) -> (i32, i32) {
    %c0_i32 = arith.constant 0 : i32
    %c0_i32_0 = arith.constant 0 : i32
    %c0_i32_1 = arith.constant 0 : i32
    return %c0_i32, %c0_i32_0 : i32, i32
  }
  func.func @transform_4(%arg0: i32) -> (i32, i32) {
    %c0_i32 = arith.constant 0 : i32
    %c0_i32_0 = arith.constant 0 : i32
    %c0_i32_1 = arith.constant 0 : i32
    return %c0_i32, %c0_i32_0 : i32, i32
  }
  func.func @transform_5(%arg0: i32) -> (i32, i32) {
    %c0_i32 = arith.constant 0 : i32
    %c0_i32_0 = arith.constant 0 : i32
    %c0_i32_1 = arith.constant 0 : i32
    return %c0_i32, %c0_i32_0 : i32, i32
  }
  func.func @transform_6(%arg0: i32) -> (i32, i32) {
    %c0_i32 = arith.constant 0 : i32
    %c0_i32_0 = arith.constant 0 : i32
    %c0_i32_1 = arith.constant 0 : i32
    return %c0_i32, %c0_i32_0 : i32, i32
  }
  func.func @transform_7(%arg0: i32) -> (i32, i32) {
    %c0_i32 = arith.constant 0 : i32
    %c0_i32_0 = arith.constant 0 : i32
    %c0_i32_1 = arith.constant 0 : i32
    return %c0_i32, %c0_i32_0 : i32, i32
  }
  func.func @transform_8(%arg0: i32) -> (i32, i32) {
    %c0_i32 = arith.constant 0 : i32
    %c0_i32_0 = arith.constant 0 : i32
    %c0_i32_1 = arith.constant 0 : i32
    return %c0_i32, %c0_i32_0 : i32, i32
  }
  func.func @transform_9(%arg0: i32) -> (i32, i32) {
    %c0_i32 = arith.constant 0 : i32
    %c0_i32_0 = arith.constant 0 : i32
    %c0_i32_1 = arith.constant 0 : i32
    return %c0_i32, %c0_i32_0 : i32, i32
  }
  func.func @transform_10(%arg0: i32) -> (i32, i32) {
    %c0_i32 = arith.constant 0 : i32
    %c0_i32_0 = arith.constant 0 : i32
    %c0_i32_1 = arith.constant 0 : i32
    return %c0_i32, %c0_i32_0 : i32, i32
  }
  func.func @transform_11(%arg0: i32) -> (i32, i32) {
    %c0_i32 = arith.constant 0 : i32
    %c0_i32_0 = arith.constant 0 : i32
    %c0_i32_1 = arith.constant 0 : i32
    return %c0_i32, %c0_i32_0 : i32, i32
  }
  func.func @transform_12(%arg0: i32) -> (i32, i32) {
    %c0_i32 = arith.constant 0 : i32
    %c0_i32_0 = arith.constant 0 : i32
    %c0_i32_1 = arith.constant 0 : i32
    return %c0_i32, %c0_i32_0 : i32, i32
  }
  func.func @transform_13(%arg0: i32) -> (i32, i32) {
    %c0_i32 = arith.constant 0 : i32
    %c0_i32_0 = arith.constant 0 : i32
    %c0_i32_1 = arith.constant 0 : i32
    return %c0_i32, %c0_i32_0 : i32, i32
  }
  func.func @transform_14(%arg0: i32) -> (i32, i32) {
    %c0_i32 = arith.constant 0 : i32
    %c0_i32_0 = arith.constant 0 : i32
    return %arg0, %c0_i32 : i32, i32
  }
  func.func @transform_15(%arg0: i32) -> (i32, i32) {
    %c0_i32 = arith.constant 0 : i32
    %c0_i32_0 = arith.constant 0 : i32
    return %arg0, %c0_i32 : i32, i32
  }
}

</mosaic_0001>

<bundles_post_ra>
// kernel: tpu_custom_call.1
= control target key start
LH: loop header
LB: loop body
LE: loop exit
PB: predicated region body
PF: predicated region fallthrough
CT: control target
= control target key end

     0   :  { %21 = vsyncpa [#allocation4], 0  ;;  %s4401_s0 = inlined_call_operand.vmem [shape: f32[8], index: 0, kind: input, shape index: {}]   ;;  %s4402_s1 = inlined_call_operand.vmem [shape: f32[1,16,4], index: 1, kind: input, shape index: {}]   ;;  %s4403_s2 = inlined_call_operand.vmem [shape: bf16[4,96], index: 2, kind: input, shape index: {}]   ;;  %s4404_s3 = inlined_call_operand.vmem [shape: bf16[32,96], index: 3, kind: input, shape index: {}]   ;;  %s4405_s4 = inlined_call_operand.vmem [shape: f32[1,96], index: 4, kind: input, shape index: {}]   ;;  %s4406_s5 = inlined_call_operand.vmem [shape: f32[1,32], index: 5, kind: input, shape index: {}]   ;;  %s4407_s6 = inlined_call_operand.vmem [shape: bf16[32,32], index: 6, kind: input, shape index: {}]   ;;  %s4408_s7 = inlined_call_operand.vmem [shape: f32[1,32], index: 7, kind: input, shape index: {}]   ;;  %s4409_s8 = inlined_call_operand.vmem [shape: bf16[32,256], index: 8, kind: input, shape index: {}]   ;;  %s4410_s9 = inlined_call_operand.vmem [shape: f32[1,256], index: 9, kind: input, shape index: {}]   ;;  %s4411_s10 = inlined_call_operand.vmem [shape: bf16[128,32], index: 10, kind: input, shape index: {}]   ;;  %s4412_s11 = inlined_call_operand.vmem [shape: f32[1,32], index: 11, kind: input, shape index: {}]   ;;  %s4413_s12 = inlined_call_operand.vmem [shape: bf16[128,32], index: 12, kind: input, shape index: {}]   ;;  %s4414_s13 = inlined_call_operand.vmem [shape: f32[1,32], index: 13, kind: input, shape index: {}]   ;;  %s4415_s14 = inlined_call_operand.hbm [shape: f32[2,32], index: 14, kind: output, shape index: {0}]   ;;  %s4416_s15 = inlined_call_operand.hbm [shape: f32[2,32], index: 15, kind: output, shape index: {1}]  }
   0x1   :  { %22 = vsyncpa [#allocation3], 0 }
   0x2   :  { %23 = vsyncpa [#allocation7], 0  ;;  %s30_s20 = sshll.u32 %s4401_s0, 4  ;;  %s31_s20 = int_to_ptr.vmem [resolvable:$true] %s30_s20 }
   0x3   :  { %s3499_s21 = scalar_lea.vmem %s31_s20, 16  ;;  %p3504_p1 = scmp.lt.s32.totalorder %s31_s20, %s31_s20 }
   0x4   :  { %p3500_p0 = scmp.ne.s32.totalorder %s31_s20, %s3499_s21  ;;  %p3505_p2 = scmp.lt.s32.totalorder %s3499_s21, %s3499_s21 }
   0x6   :  { %p3506_p3 = por %p3505_p2, %p3504_p1 }
   0x8   :  { %p3507_p4 = pnand %p3506_p3, %p3500_p0 }
   0xa   :  { %3510 = shalt.err (!%p3507_p4)
}
   0xb   :  { %s3561_s22 = smov [#allocation2]  }
   0xc   :  { %33 = dma.vmem_to_smem %s31_s20, 16, %s3561_s22, [#allocation4]  }
   0xd   :  { %3555 = dma.done.wait [#allocation4], 16  }
   0xe   :  { %3556 = vsyncadd [#allocation4], 4294967280 }
   0xf   :  { %63 = sfence }
  0x10   :  { %v3656_v0 = vld [vmem:[%s4404_s3] sm:$0xff]   ;;  %v3562_v1 = vmov 0.0   ;;  %vm101_vm0 = vcmask 1041408   ;;  %vm3563_vm1 = vmmov 0   ;;  %v3669_v4 = vld [vmem:[%s4404_s3 + $0x8] sm:$0xff]   ;;  %vm97_vm2 = vcmask 31744  }
  0x11   :  { %3023 = vmatprep.subr.bf16.mxu1 %v3562_v1  ;;  %3017 = vmatprep.subr.bf16.mxu0 %v3562_v1  ;;  %v65_v2 = vld [vmem:[%s4403_s2] sm:$0x3]  ;;  %v88_v6 = vld [vmem:[%s4402_s1 + $0x8] sm:$0xff]  ;;  %s3564_s18 = smov 64   ;;  %v3565_v9 = vmov 0   ;;  %s3566_s22 = smov 96  }
  0x12   :  { %3024 = vmatpush3.bf16.msra.mxu1 %v3656_v0  ;;  %v103_v3 = vsel %vm101_vm0, %v65_v2, 0  ;;  %3019 = vmatprep.mubr.msk.bf16.mxu0 %vm3563_vm1, %v3562_v1  ;;  %v87_v5 = vld [vmem:[%s4402_s1] sm:$0xff]  ;;  %v3715_v33 = vld [vmem:[%s4407_s6 + $0x8] sm:$0xff]   ;;  %vm158_vm3 = vcmask 261120   ;;  %s2814_s0 = sld [smem:[#allocation2 + $0x7]]  ;;  %s3742_s25 = sld [smem:[#allocation2 + $0x6]] }
  0x13   :  { %3018 = vmatpush3.bf16.msra.mxu0 %v103_v3  ;;  %3025 = vmatprep.subr.bf16.mxu1 %v3562_v1  ;;  %v2807_v7 = vld [vmem:[%s4406_s5] ss:$0 sm:$0xff]  ;;  %v89_v8 = vpack.c.bf16 %v88_v6, %v87_v5  ;;  %s3567_s27 = smov 32   ;;  %s3819_s28 = sld [smem:[#allocation2 + $0x5]]  ;;  %vm2767_vm4 = vcmask 254976  }
  0x14   :  { %3027 = vmatprep.mubr.msk.bf16.mxu1 %vm3563_vm1, %v3562_v1  ;;  %209 = vrot.lane.b32.xlu0 %v2807_v7, %s3564_s18  ;;  %v2809_v13 = vld [vmem:[%s4405_s4] ss:$0 sm:$0xff]  ;;  %s3897_s2 = sld [smem:[#allocation2 + $0x4]]  ;;  %s3975_s16 = sld [smem:[#allocation2 + $0x3]] }
  0x15   :  { %3031 = vmatprep.subr.bf16.mxu0 %v3562_v1  ;;  %v3709_v32 = vld [vmem:[%s4407_s6] sm:$0xff]  }
  0x16   :  { %3026 = vmatpush3.bf16.msra.mxu1 %v3669_v4  ;;  %3020 = vmatmul.mubr.msk.bf16.vlgmr.msra.gmra.mrb[0].mxu0 %vm97_vm2, %v89_v8  ;;  %v3740_v42 = vld [vmem:[%s4408_s7] ss:$0 sm:$0xff] }
  0x17   :  { %3035 = vmatprep.mubr.msk.bf16.mxu0 %vm3563_vm1, %v3562_v1  ;;  %3039 = vmatprep.subr.bf16.mxu1 %v3562_v1 }
  0x18   :  { %3032 = vmatpush3.bf16.msra.mxu0 %v3709_v32  ;;  %s234_s26 = ssub.f32 %s3742_s25, %s2814_s0 }
  0x19   :  { %3028 = vmatmul.mubr.bf16.vlgmr.msra.gmra.mrb[0].mxu1 %v3565_v9  ;;  %3033 = vmatprep.subr.bf16.mxu0 %v3562_v1  ;;  %s556_s29 = ssub.f32 %s3819_s28, %s3742_s25 }
  0x1a   :  { %3043 = vmatprep.mubr.msk.bf16.mxu1 %vm3563_vm1, %v3562_v1  ;;  %3040 = vmatpush3.bf16.msra.mxu1 %v3709_v32  ;;  %v3746_v48 = vstv %s234_s26  ;;  %s875_s30 = ssub.f32 %s3897_s2, %s3819_s28  ;;  %s2137_s28 = sld [smem:[#allocation2]] }
  0x1b   :  { %3041 = vmatprep.subr.bf16.mxu1 %v3562_v1  ;;  %s1194_s17 = ssub.f32 %s3975_s16, %s3897_s2 }
  0x1c   :  { %3034 = vmatpush3.bf16.msra.mxu0 %v3715_v33 }
  0x1d   :  { %3047 = vmatprep.subr.bf16.mxu0 %v3562_v1 }
  0x1e   :  { %3042 = vmatpush3.bf16.msra.mxu1 %v3715_v33 }
  0x1f   :  { %3055 = vmatprep.subr.bf16.mxu1 %v3562_v1 }
  0x86   :  { %v3692_v11 = vpop.permute.xlu0 %209 }
  0xe9   :  { %v139_v10 = vpop.f32.mrb[0].mxu0 }
  0xea   :  { %v3021_v12 = vpop.f32.mrb[1].mxu0  ;;  %v3701_v22 = vadd.f32 %v2809_v13, %v139_v10 }
  0xeb   :  { %v142_v14 = vpop.f32.mrb[2].mxu0 }
  0xec   :  { %v196_v15 = vpop.f32.mrb[0].mxu1  ;;  %v3697_v16 = vadd.f32 %v2809_v13, %v142_v14  ;;  %v3022_v17 = vpop.f32.mrb[3].mxu0 }
  0xed   :  { %v212_v18 = vadd.f32 %v3692_v11, %v196_v15  ;;  %v3029_v19 = vpop.f32.mrb[1].mxu1  ;;  %v202_v23 = vadd.f32 %v196_v15, %v3701_v22 }
  0xee   :  { %v199_v20 = vpop.f32.mrb[2].mxu1 }
  0xef   :  { %214 = vrot.lane.b32.xlu0 %v212_v18, %s3564_s18  ;;  %v3030_v21 = vpop.f32.mrb[3].mxu1  ;;  %v2813_v24 = vmul.f32 -1.442695, %v202_v23 }
  0xf1   :  { %3386 = vpow2.f32 %v2813_v24 }
  0xfb   :  { %v3387_v25 = vpop.eup %3386 }
  0xfc   :  { %v206_v26 = vadd.f32 1.0, %v3387_v25 }
  0xfe   :  { %3388 = vrcp.f32 %v206_v26 }
 0x108   :  { %v3389_v27 = vpop.eup %3388 }
 0x109   :  { %v224_v35 = vsub.f32 1.0, %v3389_v27  ;;  %v230_v37 = vmul.f32 0.0, %v3389_v27 }
 0x161   :  { %v215_v28 = vpop.permute.xlu0 %214 }
 0x162   :  { %v217_v29 = vmul.f32 %v3389_v27, %v215_v28 }
 0x164   :  { %219 = vrot.lane.b32.xlu1 %v217_v29, %s3564_s18 }
 0x1d6   :  { %v220_v30 = vpop.permute.xlu1 %219 }
 0x1d7   :  { %v222_v31 = vadd.f32 %v220_v30, %v3701_v22 }
 0x1d9   :  { %3390 = vtanh.f32 %v222_v31 }
 0x1e3   :  { %v3391_v34 = vpop.eup %3390 }
 0x1e4   :  { %226 = vrot.lane.b32.xlu1 %v3391_v34, %s3566_s22 }
 0x256   :  { %v227_v36 = vpop.permute.xlu1 %226 }
 0x257   :  { %v229_v38 = vmul.f32 %v227_v36, %v224_v35 }
 0x259   :  { %v3725_v39 = vadd.f32 %v230_v37, %v229_v38 }
 0x25b   :  { %v235_v40 = vpack.c.bf16 %v3725_v39, %v3725_v39 }
 0x25d   :  { %237 = vrot.lane.b32.xlu0 %v235_v40, %s3566_s22 }
 0x2cf   :  { %v238_v41 = vpop.permute.xlu0 %237 }
 0x2d0   :  { %3036 = vmatmul.mubr.msk.bf16.vlgmr.msra.gmra.mrb[4].mxu0 %vm158_vm3, %v238_v41 }
 0x2d1   :  { %3048 = vmatpush3.bf16.msra.mxu0 %v3709_v32  ;;  %3051 = vmatprep.mubr.msk.bf16.mxu0 %vm3563_vm1, %v3562_v1 }
 0x2d2   :  { %3049 = vmatprep.subr.bf16.mxu0 %v3562_v1 }
 0x2d5   :  { %3050 = vmatpush3.bf16.msra.mxu0 %v3715_v33 }
 0x2d6   :  { %3063 = vmatprep.subr.bf16.mxu0 %v3562_v1 }
 0x3a3   :  { %v288_v43 = vpop.f32.mrb[4].mxu0 }
 0x3a4   :  { %v289_v44 = vadd.f32 %v3740_v42, %v288_v43  ;;  %v3037_v45 = vpop.f32.mrb[5].mxu0 }
 0x3a5   :  { %v291_v46 = vpop.f32.mrb[6].mxu0 }
 0x3a6   :  { %3392 = vtanh.f32 %v289_v44  ;;  %v3038_v47 = vpop.f32.mrb[7].mxu0 }
 0x3b0   :  { %v3748_v49 = vpop.eup %3392 }
 0x3b1   :  { %v296_v50 = vmul.f32 %v3748_v49, %v3746_v48  ;;  %v351_v61 = vmul.f32 0.33333334, %v3748_v49 }
 0x3b3   :  { %v297_v51 = vmul.f32 0.33333334, %v296_v50 }
 0x3b5   :  { %299 = vrot.lane.b32.xlu1 %v297_v51, %s3567_s27 }
 0x427   :  { %v300_v52 = vpop.permute.xlu1 %299 }
 0x428   :  { %v302_v53 = vadd.f32 %v300_v52, %v3725_v39 }
 0x42a   :  { %v303_v54 = vpack.c.bf16 %v302_v53, %v302_v53 }
 0x42c   :  { %305 = vrot.lane.b32.xlu0 %v303_v54, %s3566_s22 }
 0x49e   :  { %v306_v55 = vpop.permute.xlu0 %305 }
 0x49f   :  { %3044 = vmatmul.mubr.msk.bf16.vlgmr.msra.gmra.mrb[4].mxu1 %vm158_vm3, %v306_v55 }
 0x4a0   :  { %3056 = vmatpush3.bf16.msra.mxu1 %v3709_v32  ;;  %3059 = vmatprep.mubr.msk.bf16.mxu1 %vm3563_vm1, %v3562_v1 }
 0x4a1   :  { %3057 = vmatprep.subr.bf16.mxu1 %v3562_v1 }
 0x4a4   :  { %3058 = vmatpush3.bf16.msra.mxu1 %v3715_v33 }
 0x4a5   :  { %3071 = vmatprep.subr.bf16.mxu1 %v3562_v1 }
 0x572   :  { %v344_v56 = vpop.f32.mrb[4].mxu1 }
 0x573   :  { %v345_v57 = vadd.f32 %v3740_v42, %v344_v56  ;;  %v3045_v58 = vpop.f32.mrb[5].mxu1 }
 0x574   :  { %v347_v59 = vpop.f32.mrb[6].mxu1 }
 0x575   :  { %3394 = vtanh.f32 %v345_v57  ;;  %v3046_v60 = vpop.f32.mrb[7].mxu1 }
 0x57f   :  { %v3395_v62 = vpop.eup %3394 }
 0x580   :  { %v352_v63 = vsub.f32 %v3395_v62, %v351_v61  ;;  %v407_v15 = vsub.f32 %v3748_v49, %v3395_v62 }
 0x582   :  { %v353_v2 = vmul.f32 %v352_v63, %v3746_v48 }
 0x584   :  { %355 = vrot.lane.b32.xlu1 %v353_v2, %s3567_s27 }
 0x5f6   :  { %v356_v3 = vpop.permute.xlu1 %355 }
 0x5f7   :  { %v358_v5 = vadd.f32 %v356_v3, %v3725_v39 }
 0x5f9   :  { %v359_v6 = vpack.c.bf16 %v358_v5, %v358_v5 }
 0x5fb   :  { %361 = vrot.lane.b32.xlu0 %v359_v6, %s3566_s22 }
 0x66d   :  { %v362_v7 = vpop.permute.xlu0 %361 }
 0x66e   :  { %3052 = vmatmul.mubr.msk.bf16.vlgmr.msra.gmra.mrb[8].mxu0 %vm158_vm3, %v362_v7 }
 0x66f   :  { %3064 = vmatpush3.bf16.msra.mxu0 %v3656_v0  ;;  %3067 = vmatprep.mubr.msk.bf16.mxu0 %vm3563_vm1, %v3562_v1 }
 0x670   :  { %3065 = vmatprep.subr.bf16.mxu0 %v3562_v1 }
 0x673   :  { %3066 = vmatpush3.bf16.msra.mxu0 %v3669_v4 }
 0x674   :  { %3079 = vmatprep.subr.bf16.mxu0 %v3562_v1 }
 0x741   :  { %v400_v8 = vpop.f32.mrb[8].mxu0 }
 0x742   :  { %v401_v10 = vadd.f32 %v3740_v42, %v400_v8  ;;  %v3053_v12 = vpop.f32.mrb[9].mxu0 }
 0x743   :  { %v403_v13 = vpop.f32.mrb[10].mxu0 }
 0x744   :  { %3396 = vtanh.f32 %v401_v10  ;;  %v3054_v14 = vpop.f32.mrb[11].mxu0 }
 0x74e   :  { %v3397_v17 = vpop.eup %3396 }
 0x74f   :  { %v408_v18 = vadd.f32 %v3397_v17, %v407_v15  ;;  %v463_v30 = vadd.f32 %v3397_v17, %v3395_v62  ;;  %v3824_v17 = vstv %s556_s29 }
 0x751   :  { %v409_v19 = vmul.f32 %v408_v18, %v3746_v48  ;;  %v464_v31 = vmul.f32 3.0, %v463_v30 }
 0x753   :  { %411 = vrot.lane.b32.xlu1 %v409_v19, %s3567_s27  ;;  %v465_v34 = vadd.f32 %v3748_v49, %v464_v31 }
 0x7c5   :  { %v412_v20 = vpop.permute.xlu1 %411 }
 0x7c6   :  { %v414_v21 = vadd.f32 %v412_v20, %v3725_v39 }
 0x7c8   :  { %v415_v23 = vpack.c.bf16 %v414_v21, %v414_v21 }
 0x7ca   :  { %417 = vrot.lane.b32.xlu0 %v415_v23, %s3566_s22 }
 0x83c   :  { %v418_v24 = vpop.permute.xlu0 %417 }
 0x83d   :  { %3060 = vmatmul.mubr.msk.bf16.vlgmr.msra.gmra.mrb[8].mxu1 %vm158_vm3, %v418_v24 }
 0x83e   :  { %3072 = vmatpush3.bf16.msra.mxu1 %v3709_v32  ;;  %3075 = vmatprep.mubr.msk.bf16.mxu1 %vm3563_vm1, %v3562_v1 }
 0x83f   :  { %3073 = vmatprep.subr.bf16.mxu1 %v3562_v1 }
 0x842   :  { %3074 = vmatpush3.bf16.msra.mxu1 %v3715_v33 }
 0x843   :  { %3087 = vmatprep.subr.bf16.mxu1 %v3562_v1 }
 0x910   :  { %v456_v25 = vpop.f32.mrb[8].mxu1 }
 0x911   :  { %v457_v26 = vadd.f32 %v3740_v42, %v456_v25  ;;  %v3061_v27 = vpop.f32.mrb[9].mxu1 }
 0x912   :  { %v459_v28 = vpop.f32.mrb[10].mxu1 }
 0x913   :  { %3398 = vtanh.f32 %v457_v26  ;;  %v3062_v29 = vpop.f32.mrb[11].mxu1 }
 0x91d   :  { %v3399_v35 = vpop.eup %3398 }
 0x91e   :  { %v466_v36 = vadd.f32 %v3399_v35, %v465_v34 }
 0x920   :  { %v467_v37 = vmul.f32 %v466_v36, %v3746_v48 }
 0x922   :  { %v468_v38 = vmul.f32 0.125, %v467_v37 }
 0x924   :  { %470 = vrot.lane.b32.xlu1 %v468_v38, %s3567_s27 }
 0x996   :  { %v471_v40 = vpop.permute.xlu1 %470 }
 0x997   :  { %v473_v41 = vadd.f32 %v471_v40, %v3725_v39 }
 0x999   :  { %v474_v43 = vpack.c.bf16 %v473_v41, %v473_v41  ;;  %v551_v61 = vrot.slane %v473_v41, 6 }
 0x99b   :  { %476 = vrot.lane.b32.xlu0 %v474_v43, %s3566_s22 }
 0xa0d   :  { %v477_v44 = vpop.permute.xlu0 %476 }
 0xa0e   :  { %3068 = vmatmul.mubr.msk.bf16.vlgmr.msra.gmra.mrb[12].mxu0 %vm158_vm3, %v477_v44 }
 0xa0f   :  { %3080 = vmatpush3.bf16.msra.mxu0 %v3709_v32  ;;  %3083 = vmatprep.mubr.msk.bf16.mxu0 %vm3563_vm1, %v3562_v1 }
 0xa10   :  { %3081 = vmatprep.subr.bf16.mxu0 %v3562_v1 }
 0xa13   :  { %3082 = vmatpush3.bf16.msra.mxu0 %v3715_v33 }
 0xa14   :  { %3095 = vmatprep.subr.bf16.mxu0 %v3562_v1 }
 0xae1   :  { %v515_v45 = vpop.f32.mrb[12].mxu0 }
 0xae2   :  { %v531_v39 = vadd.f32 %v515_v45, %v3692_v11  ;;  %v3069_v46 = vpop.f32.mrb[13].mxu0  ;;  %v522_v50 = vrot.slane %v515_v45, 6 }
 0xae3   :  { %v518_v47 = vpop.f32.mrb[14].mxu0 }
 0xae4   :  { %v533_v48 = vrot.slane %v531_v39, 6  ;;  %v3070_v49 = vpop.f32.mrb[15].mxu0  ;;  %v524_v51 = vadd.f32 %v522_v50, %v3701_v22 }
 0xae6   :  { %534 = vrot.lane.b32.xlu1 %v533_v48, %s3564_s18  ;;  %v2823_v52 = vmul.f32 -1.442695, %v524_v51 }
 0xae8   :  { %3400 = vpow2.f32 %v2823_v52 }
 0xaf2   :  { %v3401_v53 = vpop.eup %3400 }
 0xaf3   :  { %v528_v54 = vadd.f32 1.0, %v3401_v53 }
 0xaf5   :  { %3402 = vrcp.f32 %v528_v54 }
 0xaff   :  { %v3403_v55 = vpop.eup %3402 }
 0xb00   :  { %v544_v62 = vsub.f32 1.0, %v3403_v55  ;;  %v553_v2 = vmul.f32 %v3403_v55, %v551_v61 }
 0xb58   :  { %v535_v56 = vpop.permute.xlu1 %534 }
 0xb59   :  { %v537_v57 = vmul.f32 %v3403_v55, %v535_v56 }
 0xb5b   :  { %539 = vrot.lane.b32.xlu0 %v537_v57, %s3564_s18 }
 0xbcd   :  { %v540_v58 = vpop.permute.xlu0 %539 }
 0xbce   :  { %v542_v59 = vadd.f32 %v540_v58, %v3701_v22 }
 0xbd0   :  { %3404 = vtanh.f32 %v542_v59 }
 0xbda   :  { %v3405_v60 = vpop.eup %3404 }
 0xbdb   :  { %546 = vrot.lane.b32.xlu1 %v3405_v60, %s3566_s22 }
 0xc4d   :  { %v547_v63 = vpop.permute.xlu1 %546 }
 0xc4e   :  { %v549_v3 = vmul.f32 %v547_v63, %v544_v62 }
 0xc50   :  { %v3807_v5 = vadd.f32 %v553_v2, %v549_v3 }
 0xc52   :  { %v557_v6 = vpack.c.bf16 %v3807_v5, %v3807_v5 }
 0xc54   :  { %v559_v7 = vrot.slane %v557_v6, 1 }
 0xc56   :  { %560 = vrot.lane.b32.xlu0 %v559_v7, %s3566_s22 }
 0xcc8   :  { %v561_v8 = vpop.permute.xlu0 %560 }
 0xcc9   :  { %3076 = vmatmul.mubr.msk.bf16.vlgmr.msra.gmra.mrb[12].mxu1 %vm158_vm3, %v561_v8 }
 0xcca   :  { %3088 = vmatpush3.bf16.msra.mxu1 %v3709_v32  ;;  %3091 = vmatprep.mubr.msk.bf16.mxu1 %vm3563_vm1, %v3562_v1 }
 0xccb   :  { %3089 = vmatprep.subr.bf16.mxu1 %v3562_v1 }
 0xcce   :  { %3090 = vmatpush3.bf16.msra.mxu1 %v3715_v33 }
 0xccf   :  { %3103 = vmatprep.subr.bf16.mxu1 %v3562_v1 }
 0xd9c   :  { %v599_v10 = vpop.f32.mrb[12].mxu1 }
 0xd9d   :  { %v600_v12 = vadd.f32 %v3740_v42, %v599_v10  ;;  %v3077_v13 = vpop.f32.mrb[13].mxu1 }
 0xd9e   :  { %v602_v14 = vpop.f32.mrb[14].mxu1 }
 0xd9f   :  { %3406 = vtanh.f32 %v600_v12  ;;  %v3078_v15 = vpop.f32.mrb[15].mxu1 }
 0xda9   :  { %v3826_v18 = vpop.eup %3406 }
 0xdaa   :  { %v607_v19 = vmul.f32 %v3826_v18, %v3824_v17  ;;  %v664_v35 = vmul.f32 0.33333334, %v3826_v18 }
 0xdac   :  { %v608_v20 = vmul.f32 0.33333334, %v607_v19 }
 0xdae   :  { %v610_v21 = vrot.slane %v608_v20, 6 }
 0xdb0   :  { %611 = vrot.lane.b32.xlu1 %v610_v21, %s3567_s27 }
 0xe22   :  { %v612_v23 = vpop.permute.xlu1 %611 }
 0xe23   :  { %v614_v24 = vadd.f32 %v612_v23, %v3807_v5 }
 0xe25   :  { %v615_v25 = vpack.c.bf16 %v614_v24, %v614_v24 }
 0xe27   :  { %v617_v26 = vrot.slane %v615_v25, 1 }
 0xe29   :  { %618 = vrot.lane.b32.xlu0 %v617_v26, %s3566_s22 }
 0xe9b   :  { %v619_v27 = vpop.permute.xlu0 %618 }
 0xe9c   :  { %3084 = vmatmul.mubr.msk.bf16.vlgmr.msra.gmra.mrb[16].mxu0 %vm158_vm3, %v619_v27 }
 0xe9d   :  { %3096 = vmatpush3.bf16.msra.mxu0 %v3709_v32  ;;  %3099 = vmatprep.mubr.msk.bf16.mxu0 %vm3563_vm1, %v3562_v1 }
 0xe9e   :  { %3097 = vmatprep.subr.bf16.mxu0 %v3562_v1 }
 0xea1   :  { %3098 = vmatpush3.bf16.msra.mxu0 %v3715_v33 }
 0xea2   :  { %3111 = vmatprep.subr.bf16.mxu0 %v3562_v1 }
 0xf6f   :  { %v657_v28 = vpop.f32.mrb[16].mxu0 }
 0xf70   :  { %v658_v29 = vadd.f32 %v3740_v42, %v657_v28  ;;  %v3085_v30 = vpop.f32.mrb[17].mxu0 }
 0xf71   :  { %v660_v31 = vpop.f32.mrb[18].mxu0 }
 0xf72   :  { %3408 = vtanh.f32 %v658_v29  ;;  %v3086_v34 = vpop.f32.mrb[19].mxu0 }
 0xf7c   :  { %v3409_v36 = vpop.eup %3408 }
 0xf7d   :  { %v665_v37 = vsub.f32 %v3409_v36, %v664_v35  ;;  %v722_v51 = vsub.f32 %v3826_v18, %v3409_v36 }
 0xf7f   :  { %v666_v38 = vmul.f32 %v665_v37, %v3824_v17 }
 0xf81   :  { %v668_v40 = vrot.slane %v666_v38, 6 }
 0xf83   :  { %669 = vrot.lane.b32.xlu1 %v668_v40, %s3567_s27 }
 0xff5   :  { %v670_v41 = vpop.permute.xlu1 %669 }
 0xff6   :  { %v672_v43 = vadd.f32 %v670_v41, %v3807_v5 }
 0xff8   :  { %v673_v44 = vpack.c.bf16 %v672_v43, %v672_v43 }
 0xffa   :  { %v675_v45 = vrot.slane %v673_v44, 1 }
 0xffc   :  { %676 = vrot.lane.b32.xlu0 %v675_v45, %s3566_s22 }
0x106e   :  { %v677_v39 = vpop.permute.xlu0 %676 }
0x106f   :  { %3092 = vmatmul.mubr.msk.bf16.vlgmr.msra.gmra.mrb[16].mxu1 %vm158_vm3, %v677_v39 }
0x1070   :  { %3104 = vmatpush3.bf16.msra.mxu1 %v3656_v0  ;;  %3107 = vmatprep.mubr.msk.bf16.mxu1 %vm3563_vm1, %v3562_v1 }
0x1071   :  { %3105 = vmatprep.subr.bf16.mxu1 %v3562_v1 }
0x1074   :  { %3106 = vmatpush3.bf16.msra.mxu1 %v3669_v4 }
0x1075   :  { %3119 = vmatprep.subr.bf16.mxu1 %v3562_v1 }
0x1142   :  { %v715_v46 = vpop.f32.mrb[16].mxu1 }
0x1143   :  { %v716_v47 = vadd.f32 %v3740_v42, %v715_v46  ;;  %v3093_v48 = vpop.f32.mrb[17].mxu1 }
0x1144   :  { %v718_v49 = vpop.f32.mrb[18].mxu1 }
0x1145   :  { %3410 = vtanh.f32 %v716_v47  ;;  %v3094_v50 = vpop.f32.mrb[19].mxu1 }
0x114f   :  { %v3411_v52 = vpop.eup %3410 }
0x1150   :  { %v723_v53 = vadd.f32 %v3411_v52, %v722_v51  ;;  %v780_v6 = vadd.f32 %v3411_v52, %v3409_v36 }
0x1152   :  { %v724_v54 = vmul.f32 %v723_v53, %v3824_v17  ;;  %v781_v7 = vmul.f32 3.0, %v780_v6 }
0x1154   :  { %v726_v55 = vrot.slane %v724_v54, 6  ;;  %v782_v8 = vadd.f32 %v3826_v18, %v781_v7 }
0x1156   :  { %727 = vrot.lane.b32.xlu1 %v726_v55, %s3567_s27 }
0x11c8   :  { %v728_v56 = vpop.permute.xlu1 %727 }
0x11c9   :  { %v730_v57 = vadd.f32 %v728_v56, %v3807_v5  ;;  %v3902_v56 = vstv %s875_s30 }
0x11cb   :  { %v731_v58 = vpack.c.bf16 %v730_v57, %v730_v57 }
0x11cd   :  { %v733_v59 = vrot.slane %v731_v58, 1 }
0x11cf   :  { %734 = vrot.lane.b32.xlu0 %v733_v59, %s3566_s22 }
0x1241   :  { %v735_v60 = vpop.permute.xlu0 %734 }
0x1242   :  { %3100 = vmatmul.mubr.msk.bf16.vlgmr.msra.gmra.mrb[20].mxu0 %vm158_vm3, %v735_v60 }
0x1243   :  { %3112 = vmatpush3.bf16.msra.mxu0 %v3709_v32  ;;  %3115 = vmatprep.mubr.msk.bf16.mxu0 %vm3563_vm1, %v3562_v1 }
0x1244   :  { %3113 = vmatprep.subr.bf16.mxu0 %v3562_v1 }
0x1247   :  { %3114 = vmatpush3.bf16.msra.mxu0 %v3715_v33 }
0x1248   :  { %3127 = vmatprep.subr.bf16.mxu0 %v3562_v1 }
0x1315   :  { %v773_v61 = vpop.f32.mrb[20].mxu0 }
0x1316   :  { %v774_v62 = vadd.f32 %v3740_v42, %v773_v61  ;;  %v3101_v63 = vpop.f32.mrb[21].mxu0 }
0x1317   :  { %v776_v2 = vpop.f32.mrb[22].mxu0 }
0x1318   :  { %3412 = vtanh.f32 %v774_v62  ;;  %v3102_v3 = vpop.f32.mrb[23].mxu0 }
0x1322   :  { %v3413_v10 = vpop.eup %3412 }
0x1323   :  { %v783_v12 = vadd.f32 %v3413_v10, %v782_v8 }
0x1325   :  { %v784_v13 = vmul.f32 %v783_v12, %v3824_v17 }
0x1327   :  { %v785_v14 = vmul.f32 0.125, %v784_v13 }
0x1329   :  { %v787_v15 = vrot.slane %v785_v14, 6 }
0x132b   :  { %788 = vrot.lane.b32.xlu1 %v787_v15, %s3567_s27 }
0x139d   :  { %v789_v19 = vpop.permute.xlu1 %788 }
0x139e   :  { %v791_v20 = vadd.f32 %v789_v19, %v3807_v5 }
0x13a0   :  { %v792_v21 = vpack.c.bf16 %v791_v20, %v791_v20  ;;  %v870_v43 = vrot.slane %v791_v20, 6 }
0x13a2   :  { %v794_v23 = vrot.slane %v792_v21, 1 }
0x13a4   :  { %795 = vrot.lane.b32.xlu0 %v794_v23, %s3566_s22 }
0x1416   :  { %v796_v24 = vpop.permute.xlu0 %795 }
0x1417   :  { %3108 = vmatmul.mubr.msk.bf16.vlgmr.msra.gmra.mrb[20].mxu1 %vm158_vm3, %v796_v24 }
0x1418   :  { %3120 = vmatpush3.bf16.msra.mxu1 %v3709_v32  ;;  %3123 = vmatprep.mubr.msk.bf16.mxu1 %vm3563_vm1, %v3562_v1 }
0x1419   :  { %3121 = vmatprep.subr.bf16.mxu1 %v3562_v1 }
0x141c   :  { %3122 = vmatpush3.bf16.msra.mxu1 %v3715_v33 }
0x141d   :  { %3135 = vmatprep.subr.bf16.mxu1 %v3562_v1 }
0x14ea   :  { %v834_v17 = vpop.f32.mrb[20].mxu1 }
0x14eb   :  { %v850_v5 = vadd.f32 %v834_v17, %v3692_v11  ;;  %v3109_v18 = vpop.f32.mrb[21].mxu1  ;;  %v841_v28 = vrot.slane %v834_v17, 4 }
0x14ec   :  { %v837_v25 = vpop.f32.mrb[22].mxu1 }
0x14ed   :  { %v852_v26 = vrot.slane %v850_v5, 4  ;;  %v3110_v27 = vpop.f32.mrb[23].mxu1  ;;  %v843_v29 = vadd.f32 %v841_v28, %v3701_v22 }
0x14ef   :  { %853 = vrot.lane.b32.xlu1 %v852_v26, %s3564_s18  ;;  %v2830_v30 = vmul.f32 -1.442695, %v843_v29 }
0x14f1   :  { %3414 = vpow2.f32 %v2830_v30 }
0x14fb   :  { %v3415_v31 = vpop.eup %3414 }
0x14fc   :  { %v847_v34 = vadd.f32 1.0, %v3415_v31 }
0x14fe   :  { %3416 = vrcp.f32 %v847_v34 }
0x1508   :  { %v3417_v35 = vpop.eup %3416 }
0x1509   :  { %v863_v44 = vsub.f32 1.0, %v3417_v35  ;;  %v872_v39 = vmul.f32 %v3417_v35, %v870_v43 }
0x1561   :  { %v854_v36 = vpop.permute.xlu1 %853 }
0x1562   :  { %v856_v37 = vmul.f32 %v3417_v35, %v854_v36 }
0x1564   :  { %858 = vrot.lane.b32.xlu0 %v856_v37, %s3564_s18 }
0x15d6   :  { %v859_v38 = vpop.permute.xlu0 %858 }
0x15d7   :  { %v861_v40 = vadd.f32 %v859_v38, %v3701_v22 }
0x15d9   :  { %3418 = vtanh.f32 %v861_v40 }
0x15e3   :  { %v3419_v41 = vpop.eup %3418 }
0x15e4   :  { %865 = vrot.lane.b32.xlu1 %v3419_v41, %s3566_s22 }
0x1656   :  { %v866_v45 = vpop.permute.xlu1 %865 }
0x1657   :  { %v868_v46 = vmul.f32 %v866_v45, %v863_v44 }
0x1659   :  { %v3885_v47 = vadd.f32 %v872_v39, %v868_v46 }
0x165b   :  { %v876_v48 = vpack.c.bf16 %v3885_v47, %v3885_v47 }
0x165d   :  { %v878_v49 = vrot.slane %v876_v48, 2 }
0x165f   :  { %879 = vrot.lane.b32.xlu0 %v878_v49, %s3566_s22 }
0x16d1   :  { %v880_v50 = vpop.permute.xlu0 %879 }
0x16d2   :  { %3116 = vmatmul.mubr.msk.bf16.vlgmr.msra.gmra.mrb[24].mxu0 %vm158_vm3, %v880_v50 }
0x16d3   :  { %3128 = vmatpush3.bf16.msra.mxu0 %v3709_v32  ;;  %3131 = vmatprep.mubr.msk.bf16.mxu0 %vm3563_vm1, %v3562_v1 }
0x16d4   :  { %3129 = vmatprep.subr.bf16.mxu0 %v3562_v1 }
0x16d7   :  { %3130 = vmatpush3.bf16.msra.mxu0 %v3715_v33 }
0x16d8   :  { %3143 = vmatprep.subr.bf16.mxu0 %v3562_v1 }
0x17a5   :  { %v918_v51 = vpop.f32.mrb[24].mxu0 }
0x17a6   :  { %v919_v52 = vadd.f32 %v3740_v42, %v918_v51  ;;  %v3117_v53 = vpop.f32.mrb[25].mxu0 }
0x17a7   :  { %v921_v54 = vpop.f32.mrb[26].mxu0 }
0x17a8   :  { %3420 = vtanh.f32 %v919_v52  ;;  %v3118_v55 = vpop.f32.mrb[27].mxu0 }
0x17b2   :  { %v3904_v57 = vpop.eup %3420 }
0x17b3   :  { %v926_v58 = vmul.f32 %v3904_v57, %v3902_v56  ;;  %v983_v13 = vmul.f32 0.33333334, %v3904_v57 }
0x17b5   :  { %v927_v59 = vmul.f32 0.33333334, %v926_v58 }
0x17b7   :  { %v929_v60 = vrot.slane %v927_v59, 4 }
0x17b9   :  { %930 = vrot.lane.b32.xlu1 %v929_v60, %s3567_s27 }
0x182b   :  { %v931_v61 = vpop.permute.xlu1 %930 }
0x182c   :  { %v933_v62 = vadd.f32 %v931_v61, %v3885_v47 }
0x182e   :  { %v934_v63 = vpack.c.bf16 %v933_v62, %v933_v62 }
0x1830   :  { %v936_v2 = vrot.slane %v934_v63, 2 }
0x1832   :  { %937 = vrot.lane.b32.xlu0 %v936_v2, %s3566_s22 }
0x18a4   :  { %v938_v3 = vpop.permute.xlu0 %937 }
0x18a5   :  { %3124 = vmatmul.mubr.msk.bf16.vlgmr.msra.gmra.mrb[24].mxu1 %vm158_vm3, %v938_v3 }
0x18a6   :  { %3136 = vmatpush3.bf16.msra.mxu1 %v3709_v32  ;;  %3139 = vmatprep.mubr.msk.bf16.mxu1 %vm3563_vm1, %v3562_v1 }
0x18a7   :  { %3137 = vmatprep.subr.bf16.mxu1 %v3562_v1 }
0x18aa   :  { %3138 = vmatpush3.bf16.msra.mxu1 %v3715_v33 }
0x18ab   :  { %3151 = vmatprep.subr.bf16.mxu1 %v3562_v1 }
0x1978   :  { %v976_v6 = vpop.f32.mrb[24].mxu1 }
0x1979   :  { %v977_v7 = vadd.f32 %v3740_v42, %v976_v6  ;;  %v3125_v8 = vpop.f32.mrb[25].mxu1 }
0x197a   :  { %v979_v10 = vpop.f32.mrb[26].mxu1 }
0x197b   :  { %3422 = vtanh.f32 %v977_v7  ;;  %v3126_v12 = vpop.f32.mrb[27].mxu1 }
0x1985   :  { %v3423_v14 = vpop.eup %3422 }
0x1986   :  { %v984_v15 = vsub.f32 %v3423_v14, %v983_v13  ;;  %v1041_v29 = vsub.f32 %v3904_v57, %v3423_v14 }
0x1988   :  { %v985_v19 = vmul.f32 %v984_v15, %v3902_v56 }
0x198a   :  { %v987_v20 = vrot.slane %v985_v19, 4 }
0x198c   :  { %988 = vrot.lane.b32.xlu1 %v987_v20, %s3567_s27 }
0x19fe   :  { %v989_v21 = vpop.permute.xlu1 %988 }
0x19ff   :  { %v991_v23 = vadd.f32 %v989_v21, %v3885_v47 }
0x1a01   :  { %v992_v24 = vpack.c.bf16 %v991_v23, %v991_v23 }
0x1a03   :  { %v994_v17 = vrot.slane %v992_v24, 2 }
0x1a05   :  { %995 = vrot.lane.b32.xlu0 %v994_v17, %s3566_s22 }
0x1a77   :  { %v996_v5 = vpop.permute.xlu0 %995 }
0x1a78   :  { %3132 = vmatmul.mubr.msk.bf16.vlgmr.msra.gmra.mrb[28].mxu0 %vm158_vm3, %v996_v5 }
0x1a79   :  { %3144 = vmatpush3.bf16.msra.mxu0 %v3656_v0  ;;  %3147 = vmatprep.mubr.msk.bf16.mxu0 %vm3563_vm1, %v3562_v1 }
0x1a7a   :  { %3145 = vmatprep.subr.bf16.mxu0 %v3562_v1 }
0x1a7d   :  { %3146 = vmatpush3.bf16.msra.mxu0 %v3669_v4 }
0x1a7e   :  { %3159 = vmatprep.subr.bf16.mxu0 %v3562_v1 }
0x1b4b   :  { %v1034_v18 = vpop.f32.mrb[28].mxu0 }
0x1b4c   :  { %v1035_v25 = vadd.f32 %v3740_v42, %v1034_v18  ;;  %v3133_v26 = vpop.f32.mrb[29].mxu0 }
0x1b4d   :  { %v1037_v27 = vpop.f32.mrb[30].mxu0 }
0x1b4e   :  { %3424 = vtanh.f32 %v1035_v25  ;;  %v3134_v28 = vpop.f32.mrb[31].mxu0 }
0x1b58   :  { %v3425_v30 = vpop.eup %3424 }
0x1b59   :  { %v1042_v0 = vadd.f32 %v3425_v30, %v1041_v29  ;;  %v1099_v39 = vadd.f32 %v3425_v30, %v3423_v14 }
0x1b5b   :  { %v1043_v31 = vmul.f32 %v1042_v0, %v3902_v56  ;;  %v1100_v46 = vmul.f32 3.0, %v1099_v39  ;;  %v3980_v0 = vstv %s1194_s17 }
0x1b5d   :  { %v1045_v34 = vrot.slane %v1043_v31, 4  ;;  %v1101_v48 = vadd.f32 %v3904_v57, %v1100_v46 }
0x1b5f   :  { %1046 = vrot.lane.b32.xlu1 %v1045_v34, %s3567_s27 }
0x1bd1   :  { %v1047_v35 = vpop.permute.xlu1 %1046 }
0x1bd2   :  { %v1049_v4 = vadd.f32 %v1047_v35, %v3885_v47 }
0x1bd4   :  { %v1050_v36 = vpack.c.bf16 %v1049_v4, %v1049_v4 }
0x1bd6   :  { %v1052_v37 = vrot.slane %v1050_v36, 2 }
0x1bd8   :  { %1053 = vrot.lane.b32.xlu0 %v1052_v37, %s3566_s22 }
0x1c4a   :  { %v1054_v38 = vpop.permute.xlu0 %1053 }
0x1c4b   :  { %3140 = vmatmul.mubr.msk.bf16.vlgmr.msra.gmra.mrb[28].mxu1 %vm158_vm3, %v1054_v38 }
0x1c4c   :  { %3152 = vmatpush3.bf16.msra.mxu1 %v3709_v32  ;;  %3155 = vmatprep.mubr.msk.bf16.mxu1 %vm3563_vm1, %v3562_v1 }
0x1c4d   :  { %3153 = vmatprep.subr.bf16.mxu1 %v3562_v1 }
0x1c50   :  { %3154 = vmatpush3.bf16.msra.mxu1 %v3715_v33 }
0x1c51   :  { %3167 = vmatprep.subr.bf16.mxu1 %v3562_v1 }
0x1d1e   :  { %v1092_v40 = vpop.f32.mrb[28].mxu1 }
0x1d1f   :  { %v1093_v41 = vadd.f32 %v3740_v42, %v1092_v40  ;;  %v3141_v43 = vpop.f32.mrb[29].mxu1 }
0x1d20   :  { %v1095_v44 = vpop.f32.mrb[30].mxu1 }
0x1d21   :  { %3426 = vtanh.f32 %v1093_v41  ;;  %v3142_v45 = vpop.f32.mrb[31].mxu1 }
0x1d2b   :  { %v3427_v49 = vpop.eup %3426 }
0x1d2c   :  { %v1102_v50 = vadd.f32 %v3427_v49, %v1101_v48 }
0x1d2e   :  { %v1103_v51 = vmul.f32 %v1102_v50, %v3902_v56 }
0x1d30   :  { %v1104_v52 = vmul.f32 0.125, %v1103_v51 }
0x1d32   :  { %v1106_v53 = vrot.slane %v1104_v52, 4 }
0x1d34   :  { %1107 = vrot.lane.b32.xlu1 %v1106_v53, %s3567_s27 }
0x1da6   :  { %v1108_v54 = vpop.permute.xlu1 %1107 }
0x1da7   :  { %v1110_v55 = vadd.f32 %v1108_v54, %v3885_v47 }
0x1da9   :  { %v1111_v58 = vpack.c.bf16 %v1110_v55, %v1110_v55  ;;  %v1189_v20 = vrot.slane %v1110_v55, 6 }
0x1dab   :  { %v1113_v59 = vrot.slane %v1111_v58, 2  ;;  %v4006_v58 = vld [vmem:[%s4404_s3] sm:$0xff]  }
0x1dad   :  { %1114 = vrot.lane.b32.xlu0 %v1113_v59, %s3566_s22  ;;  %v4015_v59 = vld [vmem:[%s4404_s3 + $0x8] sm:$0xff]  }
0x1e1f   :  { %v1115_v60 = vpop.permute.xlu0 %1114 }
0x1e20   :  { %3148 = vmatmul.mubr.msk.bf16.vlgmr.msra.gmra.mrb[32].mxu0 %vm158_vm3, %v1115_v60 }
0x1e21   :  { %3160 = vmatpush3.bf16.msra.mxu0 %v3709_v32  ;;  %3163 = vmatprep.mubr.msk.bf16.mxu0 %vm3563_vm1, %v3562_v1 }
0x1e22   :  { %3161 = vmatprep.subr.bf16.mxu0 %v3562_v1 }
0x1e25   :  { %3162 = vmatpush3.bf16.msra.mxu0 %v3715_v33 }
0x1e26   :  { %3175 = vmatprep.subr.bf16.mxu0 %v3562_v1 }
0x1ef3   :  { %v1153_v56 = vpop.f32.mrb[32].mxu0 }
0x1ef4   :  { %v1169_v47 = vadd.f32 %v1153_v56, %v3692_v11  ;;  %v3149_v57 = vpop.f32.mrb[33].mxu0  ;;  %v1160_v2 = vrot.slane %v1153_v56, 2 }
0x1ef5   :  { %v1156_v61 = vpop.f32.mrb[34].mxu0 }
0x1ef6   :  { %v1171_v62 = vrot.slane %v1169_v47, 2  ;;  %v3150_v63 = vpop.f32.mrb[35].mxu0  ;;  %v1162_v3 = vadd.f32 %v1160_v2, %v3701_v22 }
0x1ef8   :  { %1172 = vrot.lane.b32.xlu1 %v1171_v62, %s3564_s18  ;;  %v2837_v6 = vmul.f32 -1.442695, %v1162_v3 }
0x1efa   :  { %3428 = vpow2.f32 %v2837_v6 }
0x1f04   :  { %v3429_v7 = vpop.eup %3428 }
0x1f05   :  { %v1166_v8 = vadd.f32 1.0, %v3429_v7 }
0x1f07   :  { %3430 = vrcp.f32 %v1166_v8 }
0x1f11   :  { %v3431_v10 = vpop.eup %3430 }
0x1f12   :  { %v1182_v21 = vsub.f32 1.0, %v3431_v10  ;;  %v1191_v24 = vmul.f32 %v3431_v10, %v1189_v20 }
0x1f6a   :  { %v1173_v12 = vpop.permute.xlu1 %1172 }
0x1f6b   :  { %v1175_v13 = vmul.f32 %v3431_v10, %v1173_v12 }
0x1f6d   :  { %1177 = vrot.lane.b32.xlu0 %v1175_v13, %s3564_s18 }
0x1fdf   :  { %v1178_v14 = vpop.permute.xlu0 %1177 }
0x1fe0   :  { %v1180_v15 = vadd.f32 %v1178_v14, %v3701_v22  ;;  %v4029_v14 = vld [vmem:[%s4407_s6] sm:$0xff]  }
0x1fe2   :  { %3432 = vtanh.f32 %v1180_v15  ;;  %v4038_v15 = vld [vmem:[%s4407_s6 + $0x8] sm:$0xff]   ;;  %s4073_s6 = sld [smem:[#allocation2 + $0x2]] }
0x1fe8   :  { %s1509_s25 = ssub.f32 %s4073_s6, %s3975_s16 }
0x1fec   :  { %v3433_v19 = vpop.eup %3432 }
0x1fed   :  { %1184 = vrot.lane.b32.xlu1 %v3433_v19, %s3566_s22 }
0x205f   :  { %v1185_v23 = vpop.permute.xlu1 %1184 }
0x2060   :  { %v1187_v17 = vmul.f32 %v1185_v23, %v1182_v21 }
0x2062   :  { %v3963_v5 = vadd.f32 %v1191_v24, %v1187_v17 }
0x2064   :  { %v1195_v18 = vpack.c.bf16 %v3963_v5, %v3963_v5 }
0x2066   :  { %v1197_v25 = vrot.slane %v1195_v18, 3 }
0x2068   :  { %1198 = vrot.lane.b32.xlu0 %v1197_v25, %s3566_s22 }
0x20da   :  { %v1199_v26 = vpop.permute.xlu0 %1198 }
0x20db   :  { %3156 = vmatmul.mubr.msk.bf16.vlgmr.msra.gmra.mrb[32].mxu1 %vm158_vm3, %v1199_v26 }
0x20dc   :  { %3168 = vmatpush3.bf16.msra.mxu1 %v3709_v32  ;;  %3171 = vmatprep.mubr.msk.bf16.mxu1 %vm3563_vm1, %v3562_v1 }
0x20dd   :  { %3169 = vmatprep.subr.bf16.mxu1 %v3562_v1 }
0x20e0   :  { %3170 = vmatpush3.bf16.msra.mxu1 %v3715_v33 }
0x20e1   :  { %3183 = vmatprep.subr.bf16.mxu1 %v3562_v1 }
0x21ae   :  { %v1237_v22 = vpop.f32.mrb[32].mxu1 }
0x21af   :  { %v1238_v27 = vadd.f32 %v3740_v42, %v1237_v22  ;;  %v3157_v28 = vpop.f32.mrb[33].mxu1 }
0x21b0   :  { %v1240_v29 = vpop.f32.mrb[34].mxu1 }
0x21b1   :  { %3434 = vtanh.f32 %v1238_v27  ;;  %v3158_v30 = vpop.f32.mrb[35].mxu1 }
0x21bb   :  { %v3982_v31 = vpop.eup %3434 }
0x21bc   :  { %v1245_v34 = vmul.f32 %v3982_v31, %v3980_v0  ;;  %v1302_v48 = vmul.f32 0.33333334, %v3982_v31 }
0x21be   :  { %v1246_v35 = vmul.f32 0.33333334, %v1245_v34 }
0x21c0   :  { %v1248_v4 = vrot.slane %v1246_v35, 2 }
0x21c2   :  { %1249 = vrot.lane.b32.xlu1 %v1248_v4, %s3567_s27 }
0x2234   :  { %v1250_v36 = vpop.permute.xlu1 %1249 }
0x2235   :  { %v1252_v37 = vadd.f32 %v1250_v36, %v3963_v5 }
0x2237   :  { %v1253_v38 = vpack.c.bf16 %v1252_v37, %v1252_v37 }
0x2239   :  { %v1255_v40 = vrot.slane %v1253_v38, 3 }
0x223b   :  { %1256 = vrot.lane.b32.xlu0 %v1255_v40, %s3566_s22 }
0x22ad   :  { %v1257_v41 = vpop.permute.xlu0 %1256 }
0x22ae   :  { %3164 = vmatmul.mubr.msk.bf16.vlgmr.msra.gmra.mrb[36].mxu0 %vm158_vm3, %v1257_v41 }
0x22af   :  { %3176 = vmatpush3.bf16.msra.mxu0 %v3709_v32  ;;  %3179 = vmatprep.mubr.msk.bf16.mxu0 %vm3563_vm1, %v3562_v1 }
0x22b0   :  { %3177 = vmatprep.subr.bf16.mxu0 %v3562_v1 }
0x22b3   :  { %3178 = vmatpush3.bf16.msra.mxu0 %v3715_v33 }
0x22b4   :  { %3191 = vmatprep.subr.bf16.mxu0 %v3562_v1 }
0x2381   :  { %v1295_v43 = vpop.f32.mrb[36].mxu0 }
0x2382   :  { %v1296_v44 = vadd.f32 %v3740_v42, %v1295_v43  ;;  %v3165_v45 = vpop.f32.mrb[37].mxu0 }
0x2383   :  { %v1298_v39 = vpop.f32.mrb[38].mxu0 }
0x2384   :  { %3436 = vtanh.f32 %v1296_v44  ;;  %v3166_v46 = vpop.f32.mrb[39].mxu0 }
0x238e   :  { %v3437_v49 = vpop.eup %3436 }
0x238f   :  { %v1303_v32 = vsub.f32 %v3437_v49, %v1302_v48  ;;  %v1360_v62 = vsub.f32 %v3982_v31, %v3437_v49 }
0x2391   :  { %v1304_v50 = vmul.f32 %v1303_v32, %v3980_v0 }
0x2393   :  { %v1306_v51 = vrot.slane %v1304_v50, 2 }
0x2395   :  { %1307 = vrot.lane.b32.xlu1 %v1306_v51, %s3567_s27 }
0x2407   :  { %v1308_v52 = vpop.permute.xlu1 %1307 }
0x2408   :  { %v1310_v33 = vadd.f32 %v1308_v52, %v3963_v5 }
0x240a   :  { %v1311_v53 = vpack.c.bf16 %v1310_v33, %v1310_v33 }
0x240c   :  { %v1313_v54 = vrot.slane %v1311_v53, 3 }
0x240e   :  { %1314 = vrot.lane.b32.xlu0 %v1313_v54, %s3566_s22 }
0x2480   :  { %v1315_v55 = vpop.permute.xlu0 %1314 }
0x2481   :  { %3172 = vmatmul.mubr.msk.bf16.vlgmr.msra.gmra.mrb[36].mxu1 %vm158_vm3, %v1315_v55 }
0x2482   :  { %3184 = vmatpush3.bf16.msra.mxu1 %v4006_v58  ;;  %3187 = vmatprep.mubr.msk.bf16.mxu1 %vm3563_vm1, %v3562_v1 }
0x2483   :  { %3185 = vmatprep.subr.bf16.mxu1 %v3562_v1 }
0x2486   :  { %3186 = vmatpush3.bf16.msra.mxu1 %v4015_v59 }
0x2487   :  { %3199 = vmatprep.subr.bf16.mxu1 %v3562_v1 }
0x2554   :  { %v1353_v60 = vpop.f32.mrb[36].mxu1 }
0x2555   :  { %v1354_v56 = vadd.f32 %v3740_v42, %v1353_v60  ;;  %v3173_v47 = vpop.f32.mrb[37].mxu1 }
0x2556   :  { %v1356_v57 = vpop.f32.mrb[38].mxu1 }
0x2557   :  { %3438 = vtanh.f32 %v1354_v56  ;;  %v3174_v61 = vpop.f32.mrb[39].mxu1  ;;  %v4078_v56 = vld [vmem:[%s4408_s7] ss:$0 sm:$0xff]  ;;  %s4156_s7 = sld [smem:[#allocation2 + $0x1]] }
0x255d   :  { %s1819_s26 = ssub.f32 %s4156_s7, %s4073_s6 }
0x255e   :  { %s2138_s29 = ssub.f32 %s2137_s28, %s4156_s7 }
0x2561   :  { %v3439_v63 = vpop.eup %3438 }
0x2562   :  { %v1361_v2 = vadd.f32 %v3439_v63, %v1360_v62  ;;  %v1418_v17 = vadd.f32 %v3439_v63, %v3437_v49  ;;  %v4083_v63 = vstv %s1509_s25 }
0x2564   :  { %v1362_v3 = vmul.f32 %v1361_v2, %v3980_v0  ;;  %v1419_v18 = vmul.f32 3.0, %v1418_v17 }
0x2566   :  { %v1364_v6 = vrot.slane %v1362_v3, 2  ;;  %v1420_v25 = vadd.f32 %v3982_v31, %v1419_v18 }
0x2568   :  { %1365 = vrot.lane.b32.xlu1 %v1364_v6, %s3567_s27 }
0x25da   :  { %v1366_v7 = vpop.permute.xlu1 %1365 }
0x25db   :  { %v1368_v8 = vadd.f32 %v1366_v7, %v3963_v5 }
0x25dd   :  { %v1369_v10 = vpack.c.bf16 %v1368_v8, %v1368_v8 }
0x25df   :  { %v1371_v12 = vrot.slane %v1369_v10, 3 }
0x25e1   :  { %1372 = vrot.lane.b32.xlu0 %v1371_v12, %s3566_s22 }
0x2653   :  { %v1373_v13 = vpop.permute.xlu0 %1372 }
0x2654   :  { %3180 = vmatmul.mubr.msk.bf16.vlgmr.msra.gmra.mrb[40].mxu0 %vm158_vm3, %v1373_v13 }
0x2655   :  { %3192 = vmatpush3.bf16.msra.mxu0 %v4029_v14  ;;  %3195 = vmatprep.mubr.msk.bf16.mxu0 %vm3563_vm1, %v3562_v1 }
0x2656   :  { %3193 = vmatprep.subr.bf16.mxu0 %v3562_v1 }
0x2659   :  { %3194 = vmatpush3.bf16.msra.mxu0 %v4038_v15 }
0x265a   :  { %3207 = vmatprep.subr.bf16.mxu0 %v3562_v1 }
0x2727   :  { %v1411_v19 = vpop.f32.mrb[40].mxu0 }
0x2728   :  { %v1412_v20 = vadd.f32 %v3740_v42, %v1411_v19  ;;  %v3181_v21 = vpop.f32.mrb[41].mxu0 }
0x2729   :  { %v1414_v23 = vpop.f32.mrb[42].mxu0 }
0x272a   :  { %3440 = vtanh.f32 %v1412_v20  ;;  %v3182_v24 = vpop.f32.mrb[43].mxu0 }
0x2734   :  { %v3441_v26 = vpop.eup %3440 }
0x2735   :  { %v1421_v22 = vadd.f32 %v3441_v26, %v1420_v25 }
0x2737   :  { %v1422_v27 = vmul.f32 %v1421_v22, %v3980_v0 }
0x2739   :  { %v1423_v28 = vmul.f32 0.125, %v1422_v27 }
0x273b   :  { %v1425_v29 = vrot.slane %v1423_v28, 2 }
0x273d   :  { %1426 = vrot.lane.b32.xlu1 %v1425_v29, %s3567_s27 }
0x27af   :  { %v1427_v30 = vpop.permute.xlu1 %1426 }
0x27b0   :  { %v1429_v34 = vadd.f32 %v1427_v30, %v3963_v5 }
0x27b2   :  { %v1430_v42 = vpack.c.bf16 %v1429_v34, %v1429_v34  ;;  %v1504_v32 = vrot.slane %v1429_v34, 6 }
0x27b4   :  { %v1432_v35 = vrot.slane %v1430_v42, 3 }
0x27b6   :  { %1433 = vrot.lane.b32.xlu0 %v1432_v35, %s3566_s22 }
0x2828   :  { %v1434_v4 = vpop.permute.xlu0 %1433 }
0x2829   :  { %3188 = vmatmul.mubr.msk.bf16.vlgmr.msra.gmra.mrb[40].mxu1 %vm158_vm3, %v1434_v4 }
0x282a   :  { %3200 = vmatpush3.bf16.msra.mxu1 %v4029_v14  ;;  %3203 = vmatprep.mubr.msk.bf16.mxu1 %vm3563_vm1, %v3562_v1 }
0x282b   :  { %3201 = vmatprep.subr.bf16.mxu1 %v3562_v1 }
0x282e   :  { %3202 = vmatpush3.bf16.msra.mxu1 %v4038_v15 }
0x282f   :  { %3215 = vmatprep.subr.bf16.mxu1 %v3562_v1 }
0x28fc   :  { %v1472_v0 = vpop.f32.mrb[40].mxu1 }
0x28fd   :  { %v1485_v5 = vadd.f32 %v1472_v0, %v3692_v11  ;;  %v3189_v31 = vpop.f32.mrb[41].mxu1  ;;  %v1478_v38 = vadd.f32 %v1472_v0, %v3697_v16 }
0x28fe   :  { %v1475_v36 = vpop.f32.mrb[42].mxu1 }
0x28ff   :  { %1487 = vrot.lane.b32.xlu1 %v1485_v5, %s3564_s18  ;;  %v3190_v37 = vpop.f32.mrb[43].mxu1  ;;  %v2844_v40 = vmul.f32 -1.442695, %v1478_v38 }
0x2901   :  { %3442 = vpow2.f32 %v2844_v40 }
0x290b   :  { %v3443_v41 = vpop.eup %3442 }
0x290c   :  { %v1482_v43 = vadd.f32 1.0, %v3443_v41 }
0x290e   :  { %3444 = vrcp.f32 %v1482_v43 }
0x2918   :  { %v3445_v44 = vpop.eup %3444 }
0x2919   :  { %v1497_v50 = vsub.f32 1.0, %v3445_v44  ;;  %v1506_v52 = vmul.f32 %v3445_v44, %v1504_v32 }
0x2971   :  { %v1488_v45 = vpop.permute.xlu1 %1487 }
0x2972   :  { %v1490_v39 = vmul.f32 %v3445_v44, %v1488_v45 }
0x2974   :  { %1492 = vrot.lane.b32.xlu0 %v1490_v39, %s3564_s18 }
0x29e6   :  { %v1493_v46 = vpop.permute.xlu0 %1492 }
0x29e7   :  { %v1495_v48 = vadd.f32 %v1493_v46, %v3697_v16 }
0x29e9   :  { %3446 = vtanh.f32 %v1495_v48 }
0x29f3   :  { %v3447_v49 = vpop.eup %3446 }
0x29f4   :  { %1499 = vrot.lane.b32.xlu1 %v3447_v49, %s3566_s22 }
0x2a66   :  { %v1500_v51 = vpop.permute.xlu1 %1499 }
0x2a67   :  { %v1502_v33 = vmul.f32 %v1500_v51, %v1497_v50 }
0x2a69   :  { %v4061_v53 = vadd.f32 %v1506_v52, %v1502_v33 }
0x2a6b   :  { %v1510_v54 = vpack.c.bf16 %v4061_v53, %v4061_v53 }
0x2a6d   :  { %1512 = vrot.lane.b32.xlu0 %v1510_v54, %s3566_s22 }
0x2adf   :  { %v1513_v55 = vpop.permute.xlu0 %1512 }
0x2ae0   :  { %3196 = vmatmul.mubr.msk.bf16.vlgmr.msra.gmra.mrb[44].mxu0 %vm158_vm3, %v1513_v55 }
0x2ae1   :  { %3208 = vmatpush3.bf16.msra.mxu0 %v4029_v14  ;;  %3211 = vmatprep.mubr.msk.bf16.mxu0 %vm3563_vm1, %v3562_v1 }
0x2ae2   :  { %3209 = vmatprep.subr.bf16.mxu0 %v3562_v1 }
0x2ae5   :  { %3210 = vmatpush3.bf16.msra.mxu0 %v4038_v15 }
0x2ae6   :  { %3223 = vmatprep.subr.bf16.mxu0 %v3562_v1 }
0x2bb3   :  { %v1551_v60 = vpop.f32.mrb[44].mxu0 }
0x2bb4   :  { %v1552_v47 = vadd.f32 %v4078_v56, %v1551_v60  ;;  %v3197_v57 = vpop.f32.mrb[45].mxu0 }
0x2bb5   :  { %v1554_v61 = vpop.f32.mrb[46].mxu0 }
0x2bb6   :  { %3448 = vtanh.f32 %v1552_v47  ;;  %v3198_v62 = vpop.f32.mrb[47].mxu0 }
0x2bc0   :  { %v4085_v2 = vpop.eup %3448 }
0x2bc1   :  { %v1559_v3 = vmul.f32 %v4085_v2, %v4083_v63  ;;  %v1614_v24 = vmul.f32 0.33333334, %v4085_v2 }
0x2bc3   :  { %v1560_v6 = vmul.f32 0.33333334, %v1559_v3 }
0x2bc5   :  { %1562 = vrot.lane.b32.xlu1 %v1560_v6, %s3567_s27 }
0x2c37   :  { %v1563_v7 = vpop.permute.xlu1 %1562 }
0x2c38   :  { %v1565_v8 = vadd.f32 %v1563_v7, %v4061_v53 }
0x2c3a   :  { %v1566_v10 = vpack.c.bf16 %v1565_v8, %v1565_v8 }
0x2c3c   :  { %1568 = vrot.lane.b32.xlu0 %v1566_v10, %s3566_s22 }
0x2cae   :  { %v1569_v12 = vpop.permute.xlu0 %1568 }
0x2caf   :  { %3204 = vmatmul.mubr.msk.bf16.vlgmr.msra.gmra.mrb[44].mxu1 %vm158_vm3, %v1569_v12 }
0x2cb0   :  { %3216 = vmatpush3.bf16.msra.mxu1 %v4029_v14  ;;  %3219 = vmatprep.mubr.msk.bf16.mxu1 %vm3563_vm1, %v3562_v1 }
0x2cb1   :  { %3217 = vmatprep.subr.bf16.mxu1 %v3562_v1 }
0x2cb4   :  { %3218 = vmatpush3.bf16.msra.mxu1 %v4038_v15 }
0x2cb5   :  { %3231 = vmatprep.subr.bf16.mxu1 %v3562_v1 }
0x2d82   :  { %v1607_v13 = vpop.f32.mrb[44].mxu1 }
0x2d83   :  { %v1608_v19 = vadd.f32 %v4078_v56, %v1607_v13  ;;  %v3205_v20 = vpop.f32.mrb[45].mxu1 }
0x2d84   :  { %v1610_v21 = vpop.f32.mrb[46].mxu1 }
0x2d85   :  { %3450 = vtanh.f32 %v1608_v19  ;;  %v3206_v23 = vpop.f32.mrb[47].mxu1 }
0x2d8f   :  { %v3451_v17 = vpop.eup %3450 }
0x2d90   :  { %v1615_v18 = vsub.f32 %v3451_v17, %v1614_v24  ;;  %v1670_v4 = vsub.f32 %v4085_v2, %v3451_v17 }
0x2d92   :  { %v1616_v25 = vmul.f32 %v1615_v18, %v4083_v63 }
0x2d94   :  { %1618 = vrot.lane.b32.xlu1 %v1616_v25, %s3567_s27 }
0x2e06   :  { %v1619_v26 = vpop.permute.xlu1 %1618 }
0x2e07   :  { %v1621_v22 = vadd.f32 %v1619_v26, %v4061_v53 }
0x2e09   :  { %v1622_v27 = vpack.c.bf16 %v1621_v22, %v1621_v22 }
0x2e0b   :  { %1624 = vrot.lane.b32.xlu0 %v1622_v27, %s3566_s22 }
0x2e7d   :  { %v1625_v28 = vpop.permute.xlu0 %1624 }
0x2e7e   :  { %3212 = vmatmul.mubr.msk.bf16.vlgmr.msra.gmra.mrb[48].mxu0 %vm158_vm3, %v1625_v28 }
0x2e7f   :  { %3224 = vmatpush3.bf16.msra.mxu0 %v4006_v58  ;;  %3227 = vmatprep.mubr.msk.bf16.mxu0 %vm3563_vm1, %v3562_v1 }
0x2e80   :  { %3225 = vmatprep.subr.bf16.mxu0 %v3562_v1 }
0x2e83   :  { %3226 = vmatpush3.bf16.msra.mxu0 %v4015_v59 }
0x2e84   :  { %3239 = vmatprep.subr.bf16.mxu0 %v3562_v1 }
0x2f51   :  { %v1663_v29 = vpop.f32.mrb[48].mxu0 }
0x2f52   :  { %v1664_v30 = vadd.f32 %v4078_v56, %v1663_v29  ;;  %v3213_v34 = vpop.f32.mrb[49].mxu0 }
0x2f53   :  { %v1666_v42 = vpop.f32.mrb[50].mxu0 }
0x2f54   :  { %3452 = vtanh.f32 %v1664_v30  ;;  %v3214_v35 = vpop.f32.mrb[51].mxu0 }
0x2f5e   :  { %v3453_v0 = vpop.eup %3452 }
0x2f5f   :  { %v1671_v5 = vadd.f32 %v3453_v0, %v1670_v4  ;;  %v1726_v46 = vadd.f32 %v3453_v0, %v3451_v17  ;;  %v4161_v4 = vstv %s1819_s26 }
0x2f61   :  { %v1672_v31 = vmul.f32 %v1671_v5, %v4083_v63  ;;  %v1727_v48 = vmul.f32 3.0, %v1726_v46 }
0x2f63   :  { %1674 = vrot.lane.b32.xlu1 %v1672_v31, %s3567_s27  ;;  %v1728_v49 = vadd.f32 %v4085_v2, %v1727_v48 }
0x2fd5   :  { %v1675_v36 = vpop.permute.xlu1 %1674 }
0x2fd6   :  { %v1677_v37 = vadd.f32 %v1675_v36, %v4061_v53 }
0x2fd8   :  { %v1678_v38 = vpack.c.bf16 %v1677_v37, %v1677_v37 }
0x2fda   :  { %1680 = vrot.lane.b32.xlu0 %v1678_v38, %s3566_s22 }
0x304c   :  { %v1681_v40 = vpop.permute.xlu0 %1680 }
0x304d   :  { %3220 = vmatmul.mubr.msk.bf16.vlgmr.msra.gmra.mrb[48].mxu1 %vm158_vm3, %v1681_v40 }
0x304e   :  { %3232 = vmatpush3.bf16.msra.mxu1 %v4029_v14  ;;  %3235 = vmatprep.mubr.msk.bf16.mxu1 %vm3563_vm1, %v3562_v1 }
0x304f   :  { %3233 = vmatprep.subr.bf16.mxu1 %v3562_v1 }
0x3052   :  { %3234 = vmatpush3.bf16.msra.mxu1 %v4038_v15 }
0x3053   :  { %3247 = vmatprep.subr.bf16.mxu1 %v3562_v1 }
0x3120   :  { %v1719_v41 = vpop.f32.mrb[48].mxu1 }
0x3121   :  { %v1720_v43 = vadd.f32 %v4078_v56, %v1719_v41  ;;  %v3221_v44 = vpop.f32.mrb[49].mxu1 }
0x3122   :  { %v1722_v45 = vpop.f32.mrb[50].mxu1 }
0x3123   :  { %3454 = vtanh.f32 %v1720_v43  ;;  %v3222_v39 = vpop.f32.mrb[51].mxu1 }
0x312d   :  { %v3455_v32 = vpop.eup %3454 }
0x312e   :  { %v1729_v50 = vadd.f32 %v3455_v32, %v1728_v49 }
0x3130   :  { %v1730_v51 = vmul.f32 %v1729_v50, %v4083_v63 }
0x3132   :  { %v1731_v52 = vmul.f32 0.125, %v1730_v51 }
0x3134   :  { %1733 = vrot.lane.b32.xlu1 %v1731_v52, %s3567_s27 }
0x31a6   :  { %v1734_v33 = vpop.permute.xlu1 %1733 }
0x31a7   :  { %v1736_v54 = vadd.f32 %v1734_v33, %v4061_v53 }
0x31a9   :  { %v1737_v55 = vpack.c.bf16 %v1736_v54, %v1736_v54  ;;  %v1814_v23 = vrot.slane %v1736_v54, 6 }
0x31ab   :  { %1739 = vrot.lane.b32.xlu0 %v1737_v55, %s3566_s22 }
0x321d   :  { %v1740_v60 = vpop.permute.xlu0 %1739 }
0x321e   :  { %3228 = vmatmul.mubr.msk.bf16.vlgmr.msra.gmra.mrb[52].mxu0 %vm158_vm3, %v1740_v60 }
0x321f   :  { %3240 = vmatpush3.bf16.msra.mxu0 %v4029_v14  ;;  %3243 = vmatprep.mubr.msk.bf16.mxu0 %vm3563_vm1, %v3562_v1 }
0x3220   :  { %3241 = vmatprep.subr.bf16.mxu0 %v3562_v1 }
0x3223   :  { %3242 = vmatpush3.bf16.msra.mxu0 %v4038_v15 }
0x3224   :  { %3255 = vmatprep.subr.bf16.mxu0 %v3562_v1 }
0x32f1   :  { %v1778_v47 = vpop.f32.mrb[52].mxu0 }
0x32f2   :  { %v1794_v53 = vadd.f32 %v1778_v47, %v3692_v11  ;;  %v3229_v57 = vpop.f32.mrb[53].mxu0  ;;  %v1785_v2 = vrot.slane %v1778_v47, 6 }
0x32f3   :  { %v1781_v61 = vpop.f32.mrb[54].mxu0 }
0x32f4   :  { %v1796_v62 = vrot.slane %v1794_v53, 6  ;;  %v3230_v63 = vpop.f32.mrb[55].mxu0  ;;  %v1787_v3 = vadd.f32 %v1785_v2, %v3697_v16 }
0x32f6   :  { %1797 = vrot.lane.b32.xlu1 %v1796_v62, %s3564_s18  ;;  %v2851_v6 = vmul.f32 -1.442695, %v1787_v3 }
0x32f8   :  { %3456 = vpow2.f32 %v2851_v6 }
0x3302   :  { %v3457_v7 = vpop.eup %3456 }
0x3303   :  { %v1791_v8 = vadd.f32 1.0, %v3457_v7 }
0x3305   :  { %3458 = vrcp.f32 %v1791_v8 }
0x330f   :  { %v3459_v10 = vpop.eup %3458 }
0x3310   :  { %v1807_v24 = vsub.f32 1.0, %v3459_v10  ;;  %v1816_v18 = vmul.f32 %v3459_v10, %v1814_v23 }
0x3368   :  { %v1798_v12 = vpop.permute.xlu1 %1797 }
0x3369   :  { %v1800_v13 = vmul.f32 %v3459_v10, %v1798_v12 }
0x336b   :  { %1802 = vrot.lane.b32.xlu0 %v1800_v13, %s3564_s18 }
0x33dd   :  { %v1803_v19 = vpop.permute.xlu0 %1802 }
0x33de   :  { %v1805_v20 = vadd.f32 %v1803_v19, %v3697_v16 }
0x33e0   :  { %3460 = vtanh.f32 %v1805_v20 }
0x33ea   :  { %v3461_v21 = vpop.eup %3460 }
0x33eb   :  { %1809 = vrot.lane.b32.xlu1 %v3461_v21, %s3566_s22 }
0x345d   :  { %v1810_v17 = vpop.permute.xlu1 %1809 }
0x345e   :  { %v1812_v25 = vmul.f32 %v1810_v17, %v1807_v24 }
0x3460   :  { %v4144_v26 = vadd.f32 %v1816_v18, %v1812_v25 }
0x3462   :  { %v1820_v22 = vpack.c.bf16 %v4144_v26, %v4144_v26 }
0x3464   :  { %v1822_v27 = vrot.slane %v1820_v22, 1 }
0x3466   :  { %1823 = vrot.lane.b32.xlu0 %v1822_v27, %s3566_s22 }
0x34d8   :  { %v1824_v28 = vpop.permute.xlu0 %1823 }
0x34d9   :  { %3236 = vmatmul.mubr.msk.bf16.vlgmr.msra.gmra.mrb[52].mxu1 %vm158_vm3, %v1824_v28 }
0x34da   :  { %3248 = vmatpush3.bf16.msra.mxu1 %v4029_v14  ;;  %3251 = vmatprep.mubr.msk.bf16.mxu1 %vm3563_vm1, %v3562_v1 }
0x34db   :  { %3249 = vmatprep.subr.bf16.mxu1 %v3562_v1 }
0x34de   :  { %3250 = vmatpush3.bf16.msra.mxu1 %v4038_v15 }
0x34df   :  { %3263 = vmatprep.subr.bf16.mxu1 %v3562_v1 }
0x35ac   :  { %v1862_v29 = vpop.f32.mrb[52].mxu1 }
0x35ad   :  { %v1863_v30 = vadd.f32 %v4078_v56, %v1862_v29  ;;  %v3237_v34 = vpop.f32.mrb[53].mxu1 }
0x35ae   :  { %v1865_v42 = vpop.f32.mrb[54].mxu1 }
0x35af   :  { %3462 = vtanh.f32 %v1863_v30  ;;  %v3238_v35 = vpop.f32.mrb[55].mxu1 }
0x35b9   :  { %v4163_v0 = vpop.eup %3462 }
0x35ba   :  { %v1870_v5 = vmul.f32 %v4163_v0, %v4161_v4  ;;  %v1927_v49 = vmul.f32 0.33333334, %v4163_v0 }
0x35bc   :  { %v1871_v31 = vmul.f32 0.33333334, %v1870_v5 }
0x35be   :  { %v1873_v36 = vrot.slane %v1871_v31, 6 }
0x35c0   :  { %1874 = vrot.lane.b32.xlu1 %v1873_v36, %s3567_s27 }
0x3632   :  { %v1875_v37 = vpop.permute.xlu1 %1874 }
0x3633   :  { %v1877_v38 = vadd.f32 %v1875_v37, %v4144_v26 }
0x3635   :  { %v1878_v40 = vpack.c.bf16 %v1877_v38, %v1877_v38 }
0x3637   :  { %v1880_v41 = vrot.slane %v1878_v40, 1 }
0x3639   :  { %1881 = vrot.lane.b32.xlu0 %v1880_v41, %s3566_s22 }
0x36ab   :  { %v1882_v43 = vpop.permute.xlu0 %1881 }
0x36ac   :  { %3244 = vmatmul.mubr.msk.bf16.vlgmr.msra.gmra.mrb[56].mxu0 %vm158_vm3, %v1882_v43 }
0x36ad   :  { %3256 = vmatpush3.bf16.msra.mxu0 %v4029_v14  ;;  %3259 = vmatprep.mubr.msk.bf16.mxu0 %vm3563_vm1, %v3562_v1 }
0x36ae   :  { %3257 = vmatprep.subr.bf16.mxu0 %v3562_v1 }
0x36b1   :  { %3258 = vmatpush3.bf16.msra.mxu0 %v4038_v15 }
0x36b2   :  { %3271 = vmatprep.subr.bf16.mxu0 %v3562_v1 }
0x377f   :  { %v1920_v44 = vpop.f32.mrb[56].mxu0 }
0x3780   :  { %v1921_v45 = vadd.f32 %v4078_v56, %v1920_v44  ;;  %v3245_v39 = vpop.f32.mrb[57].mxu0 }
0x3781   :  { %v1923_v46 = vpop.f32.mrb[58].mxu0 }
0x3782   :  { %3464 = vtanh.f32 %v1921_v45  ;;  %v3246_v48 = vpop.f32.mrb[59].mxu0 }
0x378c   :  { %v3465_v32 = vpop.eup %3464 }
0x378d   :  { %v1928_v50 = vsub.f32 %v3465_v32, %v1927_v49  ;;  %v1985_v2 = vsub.f32 %v4163_v0, %v3465_v32 }
0x378f   :  { %v1929_v51 = vmul.f32 %v1928_v50, %v4161_v4 }
0x3791   :  { %v1931_v52 = vrot.slane %v1929_v51, 6 }
0x3793   :  { %1932 = vrot.lane.b32.xlu1 %v1931_v52, %s3567_s27 }
0x3805   :  { %v1933_v33 = vpop.permute.xlu1 %1932 }
0x3806   :  { %v1935_v54 = vadd.f32 %v1933_v33, %v4144_v26 }
0x3808   :  { %v1936_v55 = vpack.c.bf16 %v1935_v54, %v1935_v54 }
0x380a   :  { %v1938_v60 = vrot.slane %v1936_v55, 1 }
0x380c   :  { %1939 = vrot.lane.b32.xlu0 %v1938_v60, %s3566_s22 }
0x387e   :  { %v1940_v47 = vpop.permute.xlu0 %1939 }
0x387f   :  { %3252 = vmatmul.mubr.msk.bf16.vlgmr.msra.gmra.mrb[56].mxu1 %vm158_vm3, %v1940_v47 }
0x3880   :  { %3264 = vmatpush3.bf16.msra.mxu1 %v4006_v58  ;;  %3267 = vmatprep.mubr.msk.bf16.mxu1 %vm3563_vm1, %v3562_v1 }
0x3881   :  { %3265 = vmatprep.subr.bf16.mxu1 %v3562_v1 }
0x3884   :  { %3266 = vmatpush3.bf16.msra.mxu1 %v4015_v59 }
0x3885   :  { %3279 = vmatprep.subr.bf16.mxu1 %v3562_v1 }
0x3952   :  { %v1978_v53 = vpop.f32.mrb[56].mxu1 }
0x3953   :  { %v1979_v57 = vadd.f32 %v4078_v56, %v1978_v53  ;;  %v3253_v61 = vpop.f32.mrb[57].mxu1 }
0x3954   :  { %v1981_v62 = vpop.f32.mrb[58].mxu1 }
0x3955   :  { %3466 = vtanh.f32 %v1979_v57  ;;  %v3254_v63 = vpop.f32.mrb[59].mxu1 }
0x395f   :  { %v3467_v3 = vpop.eup %3466 }
0x3960   :  { %v1986_v6 = vadd.f32 %v3467_v3, %v1985_v2  ;;  %v2043_v25 = vadd.f32 %v3467_v3, %v3465_v32 }
0x3962   :  { %v1987_v7 = vmul.f32 %v1986_v6, %v4161_v4  ;;  %v2044_v22 = vmul.f32 3.0, %v2043_v25 }
0x3964   :  { %v1989_v8 = vrot.slane %v1987_v7, 6  ;;  %v2045_v27 = vadd.f32 %v4163_v0, %v2044_v22 }
0x3966   :  { %1990 = vrot.lane.b32.xlu1 %v1989_v8, %s3567_s27  ;;  %v4236_v8 = vstv %s2138_s29 }
0x39d8   :  { %v1991_v10 = vpop.permute.xlu1 %1990 }
0x39d9   :  { %v1993_v12 = vadd.f32 %v1991_v10, %v4144_v26 }
0x39db   :  { %v1994_v13 = vpack.c.bf16 %v1993_v12, %v1993_v12 }
0x39dd   :  { %v1996_v19 = vrot.slane %v1994_v13, 1 }
0x39df   :  { %1997 = vrot.lane.b32.xlu0 %v1996_v19, %s3566_s22 }
0x3a51   :  { %v1998_v20 = vpop.permute.xlu0 %1997 }
0x3a52   :  { %3260 = vmatmul.mubr.msk.bf16.vlgmr.msra.gmra.mrb[60].mxu0 %vm158_vm3, %v1998_v20 }
0x3a53   :  { %3272 = vmatpush3.bf16.msra.mxu0 %v4029_v14  ;;  %3275 = vmatprep.mubr.msk.bf16.mxu0 %vm3563_vm1, %v3562_v1 }
0x3a54   :  { %3273 = vmatprep.subr.bf16.mxu0 %v3562_v1 }
0x3a57   :  { %3274 = vmatpush3.bf16.msra.mxu0 %v4038_v15 }
0x3a58   :  { %3287 = vmatprep.subr.bf16.mxu0 %v3562_v1 }
0x3b25   :  { %v2036_v21 = vpop.f32.mrb[60].mxu0 }
0x3b26   :  { %v2037_v23 = vadd.f32 %v4078_v56, %v2036_v21  ;;  %v3261_v24 = vpop.f32.mrb[61].mxu0 }
0x3b27   :  { %v2039_v17 = vpop.f32.mrb[62].mxu0 }
0x3b28   :  { %3468 = vtanh.f32 %v2037_v23  ;;  %v3262_v18 = vpop.f32.mrb[63].mxu0 }
0x3b32   :  { %v3469_v28 = vpop.eup %3468 }
0x3b33   :  { %v2046_v29 = vadd.f32 %v3469_v28, %v2045_v27 }
0x3b35   :  { %v2047_v30 = vmul.f32 %v2046_v29, %v4161_v4 }
0x3b37   :  { %v2048_v34 = vmul.f32 0.125, %v2047_v30 }
0x3b39   :  { %v2050_v42 = vrot.slane %v2048_v34, 6 }
0x3b3b   :  { %2051 = vrot.lane.b32.xlu1 %v2050_v42, %s3567_s27 }
0x3bad   :  { %v2052_v35 = vpop.permute.xlu1 %2051 }
0x3bae   :  { %v2054_v5 = vadd.f32 %v2052_v35, %v4144_v26 }
0x3bb0   :  { %v2055_v31 = vpack.c.bf16 %v2054_v5, %v2054_v5  ;;  %v2133_v33 = vrot.slane %v2054_v5, 6 }
0x3bb2   :  { %v2057_v36 = vrot.slane %v2055_v31, 1 }
0x3bb4   :  { %2058 = vrot.lane.b32.xlu0 %v2057_v36, %s3566_s22 }
0x3c26   :  { %v2059_v37 = vpop.permute.xlu0 %2058 }
0x3c27   :  { %3268 = vmatmul.mubr.msk.bf16.vlgmr.msra.gmra.mrb[60].mxu1 %vm158_vm3, %v2059_v37 }
0x3c28   :  { %3280 = vmatpush3.bf16.msra.mxu1 %v4029_v14  ;;  %3283 = vmatprep.mubr.msk.bf16.mxu1 %vm3563_vm1, %v3562_v1 }
0x3c29   :  { %3281 = vmatprep.subr.bf16.mxu1 %v3562_v1 }
0x3c2c   :  { %3282 = vmatpush3.bf16.msra.mxu1 %v4038_v15 }
0x3c2d   :  { %3295 = vmatprep.subr.bf16.mxu1 %v3562_v1 }
0x3cfa   :  { %v2097_v4 = vpop.f32.mrb[60].mxu1 }
0x3cfb   :  { %v2113_v26 = vadd.f32 %v2097_v4, %v3692_v11  ;;  %v3269_v0 = vpop.f32.mrb[61].mxu1  ;;  %v2104_v43 = vrot.slane %v2097_v4, 4 }
0x3cfc   :  { %v2100_v38 = vpop.f32.mrb[62].mxu1 }
0x3cfd   :  { %v2115_v40 = vrot.slane %v2113_v26, 4  ;;  %v3270_v41 = vpop.f32.mrb[63].mxu1  ;;  %v2106_v44 = vadd.f32 %v2104_v43, %v3697_v16 }
0x3cff   :  { %2116 = vrot.lane.b32.xlu1 %v2115_v40, %s3564_s18  ;;  %v2858_v45 = vmul.f32 -1.442695, %v2106_v44 }
0x3d01   :  { %3470 = vpow2.f32 %v2858_v45 }
0x3d0b   :  { %v3471_v39 = vpop.eup %3470 }
0x3d0c   :  { %v2110_v46 = vadd.f32 1.0, %v3471_v39 }
0x3d0e   :  { %3472 = vrcp.f32 %v2110_v46 }
0x3d18   :  { %v3473_v48 = vpop.eup %3472 }
0x3d19   :  { %v2126_v54 = vsub.f32 1.0, %v3473_v48  ;;  %v2135_v60 = vmul.f32 %v3473_v48, %v2133_v33 }
0x3d71   :  { %v2117_v49 = vpop.permute.xlu1 %2116 }
0x3d72   :  { %v2119_v32 = vmul.f32 %v3473_v48, %v2117_v49 }
0x3d74   :  { %2121 = vrot.lane.b32.xlu0 %v2119_v32, %s3564_s18 }
0x3de6   :  { %v2122_v50 = vpop.permute.xlu0 %2121 }
0x3de7   :  { %v2124_v51 = vadd.f32 %v2122_v50, %v3697_v16 }
0x3de9   :  { %3474 = vtanh.f32 %v2124_v51 }
0x3df3   :  { %v3475_v52 = vpop.eup %3474 }
0x3df4   :  { %2128 = vrot.lane.b32.xlu1 %v3475_v52, %s3566_s22 }
0x3e66   :  { %v2129_v55 = vpop.permute.xlu1 %2128 }
0x3e67   :  { %v2131_v47 = vmul.f32 %v2129_v55, %v2126_v54 }
0x3e69   :  { %v4222_v53 = vadd.f32 %v2135_v60, %v2131_v47 }
0x3e6b   :  { %v2139_v57 = vpack.c.bf16 %v4222_v53, %v4222_v53 }
0x3e6d   :  { %v2141_v61 = vrot.slane %v2139_v57, 2 }
0x3e6f   :  { %2142 = vrot.lane.b32.xlu0 %v2141_v61, %s3566_s22 }
0x3ee1   :  { %v2143_v62 = vpop.permute.xlu0 %2142 }
0x3ee2   :  { %3276 = vmatmul.mubr.msk.bf16.vlgmr.msra.gmra.mrb[64].mxu0 %vm158_vm3, %v2143_v62 }
0x3ee3   :  { %3288 = vmatpush3.bf16.msra.mxu0 %v4029_v14  ;;  %3291 = vmatprep.mubr.msk.bf16.mxu0 %vm3563_vm1, %v3562_v1 }
0x3ee4   :  { %3289 = vmatprep.subr.bf16.mxu0 %v3562_v1 }
0x3ee7   :  { %3290 = vmatpush3.bf16.msra.mxu0 %v4038_v15 }
0x3ee8   :  { %3303 = vmatprep.subr.bf16.mxu0 %v3562_v1 }
0x3fb5   :  { %v2181_v63 = vpop.f32.mrb[64].mxu0 }
0x3fb6   :  { %v2182_v2 = vadd.f32 %v4078_v56, %v2181_v63  ;;  %v3277_v3 = vpop.f32.mrb[65].mxu0 }
0x3fb7   :  { %v2184_v6 = vpop.f32.mrb[66].mxu0 }
0x3fb8   :  { %3476 = vtanh.f32 %v2182_v2  ;;  %v3278_v7 = vpop.f32.mrb[67].mxu0 }
0x3fc2   :  { %v4238_v10 = vpop.eup %3476 }
0x3fc3   :  { %v2189_v12 = vmul.f32 %v4238_v10, %v4236_v8  ;;  %v2246_v29 = vmul.f32 0.33333334, %v4238_v10 }
0x3fc5   :  { %v2190_v13 = vmul.f32 0.33333334, %v2189_v12 }
0x3fc7   :  { %v2192_v19 = vrot.slane %v2190_v13, 4 }
0x3fc9   :  { %2193 = vrot.lane.b32.xlu1 %v2192_v19, %s3567_s27 }
0x403b   :  { %v2194_v20 = vpop.permute.xlu1 %2193 }
0x403c   :  { %v2196_v21 = vadd.f32 %v2194_v20, %v4222_v53 }
0x403e   :  { %v2197_v23 = vpack.c.bf16 %v2196_v21, %v2196_v21 }
0x4040   :  { %v2199_v24 = vrot.slane %v2197_v23, 2 }
0x4042   :  { %2200 = vrot.lane.b32.xlu0 %v2199_v24, %s3566_s22 }
0x40b4   :  { %v2201_v17 = vpop.permute.xlu0 %2200 }
0x40b5   :  { %3284 = vmatmul.mubr.msk.bf16.vlgmr.msra.gmra.mrb[64].mxu1 %vm158_vm3, %v2201_v17 }
0x40b6   :  { %3296 = vmatpush3.bf16.msra.mxu1 %v4029_v14  ;;  %3299 = vmatprep.mubr.msk.bf16.mxu1 %vm3563_vm1, %v3562_v1 }
0x40b7   :  { %3297 = vmatprep.subr.bf16.mxu1 %v3562_v1 }
0x40ba   :  { %3298 = vmatpush3.bf16.msra.mxu1 %v4038_v15 }
0x4188   :  { %v2239_v18 = vpop.f32.mrb[64].mxu1 }
0x4189   :  { %v2240_v25 = vadd.f32 %v4078_v56, %v2239_v18  ;;  %v3285_v22 = vpop.f32.mrb[65].mxu1 }
0x418a   :  { %v2242_v27 = vpop.f32.mrb[66].mxu1  ;;  %v3364_v22 = vld [vmem:[%s4409_s8] ss:$8 sps:$4 sm:$0xff]  }
0x418b   :  { %3478 = vtanh.f32 %v2240_v25  ;;  %v3286_v28 = vpop.f32.mrb[67].mxu1  ;;  %v3366_v27 = vld [vmem:[%s4409_s8 + $0x4] ss:$8 sps:$4 sm:$0xff]  }
0x418c   :  { %v3369_v28 = vld [vmem:[%s4409_s8 + $0x14] ss:$8 sps:$4 sm:$0xff]   ;;  %2500 = vmatprep.subr.bf16.mxu1 %v3366_v27 }
0x4195   :  { %v3479_v30 = vpop.eup %3478 }
0x4196   :  { %v2247_v34 = vsub.f32 %v3479_v30, %v2246_v29  ;;  %v2304_v40 = vsub.f32 %v4238_v10, %v3479_v30  ;;  %v3367_v29 = vld [vmem:[%s4409_s8 + $0x10] ss:$8 sps:$4 sm:$0xff]  }
0x4198   :  { %v2248_v14 = vmul.f32 %v2247_v34, %v4236_v8  ;;  %v3372_v34 = vld [vmem:[%s4411_s10 + $0x8] sm:$0xff]  }
0x419a   :  { %v2250_v42 = vrot.slane %v2248_v14, 4 }
0x419c   :  { %2251 = vrot.lane.b32.xlu1 %v2250_v42, %s3567_s27 }
0x420e   :  { %v2252_v35 = vpop.permute.xlu1 %2251 }
0x420f   :  { %v2254_v5 = vadd.f32 %v2252_v35, %v4222_v53 }
0x4211   :  { %v2255_v15 = vpack.c.bf16 %v2254_v5, %v2254_v5 }
0x4213   :  { %v2257_v31 = vrot.slane %v2255_v15, 2 }
0x4215   :  { %2258 = vrot.lane.b32.xlu0 %v2257_v31, %s3566_s22  ;;  %v3374_v31 = vld [vmem:[%s4411_s10 + $0x10] sm:$0xff]  }
0x4287   :  { %v2259_v36 = vpop.permute.xlu0 %2258 }
0x4288   :  { %3292 = vmatmul.mubr.msk.bf16.vlgmr.msra.gmra.mrb[68].mxu0 %vm158_vm3, %v2259_v36 }
0x4289   :  { %3304 = vmatpush3.bf16.msra.mxu0 %v4006_v58  ;;  %3307 = vmatprep.mubr.msk.bf16.mxu0 %vm3563_vm1, %v3562_v1 }
0x428a   :  { %3305 = vmatprep.subr.bf16.mxu0 %v3562_v1 }
0x428d   :  { %3306 = vmatpush3.bf16.msra.mxu0 %v4015_v59 }
0x428e   :  { %3311 = vmatprep.subr.bf16.mxu0 %v3562_v1 }
0x435b   :  { %v2297_v37 = vpop.f32.mrb[68].mxu0 }
0x435c   :  { %v2298_v4 = vadd.f32 %v4078_v56, %v2297_v37  ;;  %v3293_v26 = vpop.f32.mrb[69].mxu0 }
0x435d   :  { %v2300_v0 = vpop.f32.mrb[70].mxu0 }
0x435e   :  { %3480 = vtanh.f32 %v2298_v4  ;;  %v3294_v38 = vpop.f32.mrb[71].mxu0  ;;  %v3376_v4 = vld [vmem:[%s4411_s10 + $0x18] sm:$0xff]   ;;  %v3378_v0 = vld [vmem:[%s4411_s10 + $0x20] sm:$0xff]  }
0x435f   :  { %v3380_v38 = vld [vmem:[%s4411_s10 + $0x28] sm:$0xff]  }
0x4368   :  { %v3481_v41 = vpop.eup %3480 }
0x4369   :  { %v2305_v58 = vadd.f32 %v3481_v41, %v2304_v40  ;;  %v2362_v33 = vadd.f32 %v3481_v41, %v3479_v30  ;;  %v3370_v30 = vld [vmem:[%s4411_s10] sm:$0xff]  }
0x436a   :  { %v3371_v40 = vld [vmem:[%s4413_s12] sm:$0xff]  }
0x436b   :  { %v2306_v43 = vmul.f32 %v2305_v58, %v4236_v8  ;;  %v2363_v54 = vmul.f32 3.0, %v2362_v33  ;;  %v3373_v58 = vld [vmem:[%s4413_s12 + $0x8] sm:$0xff]  }
0x436d   :  { %v2308_v44 = vrot.slane %v2306_v43, 4  ;;  %v2364_v55 = vadd.f32 %v4238_v10, %v2363_v54  ;;  %v3375_v43 = vld [vmem:[%s4413_s12 + $0x10] sm:$0xff]  }
0x436f   :  { %2309 = vrot.lane.b32.xlu1 %v2308_v44, %s3567_s27  ;;  %v3377_v44 = vld [vmem:[%s4413_s12 + $0x18] sm:$0xff]  }
0x43e1   :  { %v2310_v45 = vpop.permute.xlu1 %2309 }
0x43e2   :  { %v2312_v59 = vadd.f32 %v2310_v45, %v4222_v53  ;;  %v3379_v45 = vld [vmem:[%s4413_s12 + $0x20] sm:$0xff]  }
0x43e4   :  { %v2313_v39 = vpack.c.bf16 %v2312_v59, %v2312_v59  ;;  %v3381_v59 = vld [vmem:[%s4413_s12 + $0x28] sm:$0xff]  }
0x43e6   :  { %v2315_v46 = vrot.slane %v2313_v39, 2  ;;  %v3382_v39 = vld [vmem:[%s4411_s10 + $0x30] sm:$0xff]  }
0x43e8   :  { %2316 = vrot.lane.b32.xlu0 %v2315_v46, %s3566_s22  ;;  %v3383_v46 = vld [vmem:[%s4413_s12 + $0x30] sm:$0xff]  }
0x445a   :  { %v2317_v48 = vpop.permute.xlu0 %2316 }
0x445b   :  { %3300 = vmatmul.mubr.msk.bf16.vlgmr.msra.gmra.mrb[68].mxu1 %vm158_vm3, %v2317_v48  ;;  %v3384_v48 = vld [vmem:[%s4411_s10 + $0x38] sm:$0xff]  }
0x445c   :  { %2532 = vmatprep.mubr.bf16.mxu1 %v3565_v9  ;;  %2501 = vmatpush1.bf16.msra.mxu1 %v3364_v22 }
0x445d   :  { %2502 = vmatprep.subr.bf16.mxu1 %v3369_v28 }
0x4460   :  { %2503 = vmatpush1.bf16.msra.mxu1 %v3367_v29 }
0x4461   :  { %3331 = vmatprep.subr.bf16.mxu1 %v3562_v1 }
0x452e   :  { %v2355_v49 = vpop.f32.mrb[68].mxu1 }
0x452f   :  { %v2356_v32 = vadd.f32 %v4078_v56, %v2355_v49  ;;  %v3301_v50 = vpop.f32.mrb[69].mxu1  ;;  %v3385_v49 = vld [vmem:[%s4413_s12 + $0x38] sm:$0xff]  }
0x4530   :  { %v2358_v51 = vpop.f32.mrb[70].mxu1 }
0x4531   :  { %3482 = vtanh.f32 %v2356_v32  ;;  %v3302_v52 = vpop.f32.mrb[71].mxu1  ;;  %v2463_v32 = vlaneseq }
0x4532   :  { %v2461_v52 = vld [vmem:[%s4410_s9] sm:$0x3]  ;;  %s3568_s9 = smov [#allocation5]  }
0x4533   :  { %v2464_v50 = vshrl.u32 %v2463_v32, 7  ;;  %s2784_s25 = sshll.u32 %s3568_s9, 4  ;;  %s2785_s25 = int_to_ptr.vmem [resolvable:$true] %s2784_s25 }
0x4534   :  { %p3516_p6 = scmp.lt.s32.totalorder %s2785_s25, %s2785_s25 }
0x4535   :  { %v2465_v51 = vsub.s32 0, %v2464_v50  ;;  %v2469_v33 = vsub.s32 1, %v2464_v50 }
0x4537   :  { %v2466_v54 = vrot.slane %v2461_v52, %v2465_v51 }
0x453b   :  { %v3483_v60 = vpop.eup %3482 }
0x453c   :  { %v2365_v47 = vadd.f32 %v3483_v60, %v2364_v55  ;;  %v2470_v55 = vrot.slane %v2461_v52, %v2469_v33 }
0x453e   :  { %v2366_v57 = vmul.f32 %v2365_v47, %v4236_v8 }
0x4540   :  { %v2367_v61 = vmul.f32 0.125, %v2366_v57 }
0x4542   :  { %v2369_v62 = vrot.slane %v2367_v61, 4 }
0x4544   :  { %2370 = vrot.lane.b32.xlu1 %v2369_v62, %s3567_s27 }
0x45b6   :  { %v2371_v9 = vpop.permute.xlu1 %2370 }
0x45b7   :  { %v2373_v63 = vadd.f32 %v2371_v9, %v4222_v53 }
0x45b9   :  { %v2374_v56 = vpack.c.bf16 %v2373_v63, %v2373_v63  ;;  %v2452_v14 = vrot.slane %v2373_v63, 6 }
0x45bb   :  { %v2376_v2 = vrot.slane %v2374_v56, 2 }
0x45bd   :  { %2377 = vrot.lane.b32.xlu0 %v2376_v2, %s3566_s22 }
0x462f   :  { %v2378_v3 = vpop.permute.xlu0 %2377 }
0x4630   :  { %3308 = vmatmul.mubr.msk.bf16.vlgmr.msra.gmra.mrb[72].mxu0 %vm158_vm3, %v2378_v3  ;;  %v2870_v3 = vld [vmem:[%s4412_s11] ss:$0 sm:$0xff]  ;;  %s3511_s11 = scalar_lea.vmem %s2785_s25, 32 }
0x4631   :  { %3327 = vmatprep.mubr.msk.bf16.mxu0 %vm3563_vm1, %v3562_v1  ;;  %3312 = vmatpush3.bf16.msra.mxu0 %v3370_v30  ;;  %p3512_p5 = scmp.ne.s32.totalorder %s2785_s25, %s3511_s11  ;;  %p3517_p7 = scmp.lt.s32.totalorder %s3511_s11, %s3511_s11 }
0x4632   :  { %3313 = vmatprep.subr.bf16.mxu0 %v3562_v1 }
0x4633   :  { %p3518_p8 = por %p3517_p7, %p3516_p6 }
0x4635   :  { %3314 = vmatpush3.bf16.msra.mxu0 %v3372_v34  ;;  %p3519_p9 = pnand %p3518_p8, %p3512_p5 }
0x4636   :  { %3315 = vmatprep.subr.bf16.mxu0 %v3562_v1 }
0x4639   :  { %3316 = vmatpush3.bf16.msra.mxu0 %v3374_v31 }
0x463a   :  { %3317 = vmatprep.subr.bf16.mxu0 %v3562_v1 }
0x463d   :  { %3318 = vmatpush3.bf16.msra.mxu0 %v3376_v4 }
0x463e   :  { %3319 = vmatprep.subr.bf16.mxu0 %v3562_v1 }
0x4641   :  { %3320 = vmatpush3.bf16.msra.mxu0 %v3378_v0 }
0x4642   :  { %3321 = vmatprep.subr.bf16.mxu0 %v3562_v1 }
0x4645   :  { %3322 = vmatpush3.bf16.msra.mxu0 %v3380_v38 }
0x4646   :  { %3323 = vmatprep.subr.bf16.mxu0 %v3562_v1 }
0x4649   :  { %3324 = vmatpush3.bf16.msra.mxu0 %v3382_v39 }
0x464a   :  { %3325 = vmatprep.subr.bf16.mxu0 %v3562_v1 }
0x464d   :  { %3326 = vmatpush3.bf16.msra.mxu0 %v3384_v48 }
0x4703   :  { %v2416_v6 = vpop.f32.mrb[72].mxu0 }
0x4704   :  { %v2432_v7 = vadd.f32 %v2416_v6, %v3692_v11  ;;  %v3309_v8 = vpop.f32.mrb[73].mxu0  ;;  %v2423_v53 = vrot.slane %v2416_v6, 2  ;;  %v2879_v6 = vld [vmem:[%s4414_s13] ss:$0 sm:$0xff] }
0x4705   :  { %v2419_v10 = vpop.f32.mrb[74].mxu0 }
0x4706   :  { %v2434_v12 = vrot.slane %v2432_v7, 2  ;;  %v3310_v13 = vpop.f32.mrb[75].mxu0  ;;  %v2425_v19 = vadd.f32 %v2423_v53, %v3697_v16 }
0x4708   :  { %2435 = vrot.lane.b32.xlu1 %v2434_v12, %s3564_s18  ;;  %v2864_v20 = vmul.f32 -1.442695, %v2425_v19 }
0x470a   :  { %3484 = vpow2.f32 %v2864_v20 }
0x4714   :  { %v3485_v21 = vpop.eup %3484 }
0x4715   :  { %v2429_v23 = vadd.f32 1.0, %v3485_v21 }
0x4717   :  { %3486 = vrcp.f32 %v2429_v23 }
0x4721   :  { %v3487_v24 = vpop.eup %3486 }
0x4722   :  { %v2445_v42 = vsub.f32 1.0, %v3487_v24  ;;  %v2454_v5 = vmul.f32 %v3487_v24, %v2452_v14 }
0x477a   :  { %v2436_v17 = vpop.permute.xlu1 %2435 }
0x477b   :  { %v2438_v18 = vmul.f32 %v3487_v24, %v2436_v17 }
0x477d   :  { %2440 = vrot.lane.b32.xlu0 %v2438_v18, %s3564_s18 }
0x47ef   :  { %v2441_v11 = vpop.permute.xlu0 %2440 }
0x47f0   :  { %v2443_v25 = vadd.f32 %v2441_v11, %v3697_v16 }
0x47f2   :  { %3488 = vtanh.f32 %v2443_v25 }
0x47fc   :  { %v3489_v16 = vpop.eup %3488 }
0x47fd   :  { %2447 = vrot.lane.b32.xlu1 %v3489_v16, %s3566_s22 }
0x486f   :  { %v2448_v35 = vpop.permute.xlu1 %2447 }
0x4870   :  { %v2450_v15 = vmul.f32 %v2448_v35, %v2445_v42 }
0x4872   :  { %v2455_v36 = vadd.f32 %v2454_v5, %v2450_v15 }
0x4874   :  { %v2456_v37 = vpack.c.bf16 %v2455_v36, %v2455_v36 }
0x4876   :  { %v2474_v26 = vrot.slane %v2456_v37, 3 }
0x4878   :  { %2475 = vrot.lane.b32.xlu0 %v2474_v26, %s3566_s22 }
0x48ea   :  { %v2476_v41 = vpop.permute.xlu0 %2475 }
0x48eb   :  { %2869 = vmatmul.mubr.msk.bf16.vlgmr.msra.gmra.mrb[72].mxu1 %vm158_vm3, %v2476_v41 }
0x48ec   :  { %3332 = vmatpush3.bf16.msra.mxu1 %v3371_v40  ;;  %3347 = vmatprep.mubr.msk.bf16.mxu1 %vm3563_vm1, %v3562_v1 }
0x48ed   :  { %3333 = vmatprep.subr.bf16.mxu1 %v3562_v1 }
0x48f0   :  { %3334 = vmatpush3.bf16.msra.mxu1 %v3373_v58 }
0x48f1   :  { %3335 = vmatprep.subr.bf16.mxu1 %v3562_v1 }
0x48f4   :  { %3336 = vmatpush3.bf16.msra.mxu1 %v3375_v43 }
0x48f5   :  { %3337 = vmatprep.subr.bf16.mxu1 %v3562_v1 }
0x48f8   :  { %3338 = vmatpush3.bf16.msra.mxu1 %v3377_v44 }
0x48f9   :  { %3339 = vmatprep.subr.bf16.mxu1 %v3562_v1 }
0x48fc   :  { %3340 = vmatpush3.bf16.msra.mxu1 %v3379_v45 }
0x48fd   :  { %3341 = vmatprep.subr.bf16.mxu1 %v3562_v1 }
0x4900   :  { %3342 = vmatpush3.bf16.msra.mxu1 %v3381_v59 }
0x4901   :  { %3343 = vmatprep.subr.bf16.mxu1 %v3562_v1 }
0x4904   :  { %3344 = vmatpush3.bf16.msra.mxu1 %v3383_v46 }
0x4905   :  { %3345 = vmatprep.subr.bf16.mxu1 %v3562_v1 }
0x4908   :  { %3346 = vmatpush3.bf16.msra.mxu1 %v3385_v49 }
0x49be   :  { %v2534_v60 = vpop.f32.mrb[72].mxu1 }
0x49bf   :  { %v2535_v47 = vadd.f32 %v2534_v60, %v2466_v54  ;;  %v2536_v57 = vpop.f32.mrb[73].mxu1 }
0x49c0   :  { %v2537_v1 = vadd.f32 %v2536_v57, %v2470_v55  ;;  %v2538_v61 = vpop.f32.mrb[74].mxu1 }
0x49c1   :  { %v2541_v62 = vmax.f32 %v2535_v47, 0.0  ;;  %v2539_v9 = vpop.f32.mrb[75].mxu1 }
0x49c2   :  { %v2542_v63 = vmax.f32 %v2537_v1, 0.0 }
0x49c3   :  { %v2543_v56 = vpack.c.bf16 %v2541_v62, %v2541_v62 }
0x49c4   :  { %v2544_v2 = vpack.c.bf16 %v2542_v63, %v2542_v63 }
0x49c5   :  { %3328 = vmatmul.mubr.bf16.vlgmr.msra.gmra.mrb[76].mxu0 %v2543_v56 }
0x49c6   :  { %3348 = vmatmul.mubr.bf16.vlgmr.msra.gmra.mrb[76].mxu1 %v2544_v2 }
0x4a98   :  { %v2650_v7 = vpop.f32.mrb[76].mxu0 }
0x4a99   :  { %v2651_v8 = vadd.f32 %v2870_v3, %v2650_v7  ;;  %v3329_v10 = vpop.f32.mrb[77].mxu0  ;;  %v2761_v12 = vpop.f32.mrb[76].mxu1 }
0x4a9a   :  { %v2762_v13 = vadd.f32 %v2879_v6, %v2761_v12  ;;  %v2653_v53 = vpop.f32.mrb[78].mxu0  ;;  %v3349_v19 = vpop.f32.mrb[77].mxu1 }
0x4a9b   :  { %v3330_v20 = vpop.f32.mrb[79].mxu0  ;;  %v2764_v21 = vpop.f32.mrb[78].mxu1  ;;  %2768 = vst.msk [vmem:[#allocation5] sm:$0x3] %vm2767_vm4, %v2651_v8 }
0x4a9c   :  { %v2888_v23 = vmul.f32 -1.442695, %v2762_v13  ;;  %v3350_v24 = vpop.f32.mrb[79].mxu1 }
0x4a9d   :  { %3522 = shalt.err (!%p3519_p9)
}
0x4a9e   :  { %s3523_s22 = scalar_lea.hbm %s4415_s14, 32 }
0x4a9f   :  { %p3524_p10 = scmp.ne.s32.totalorder %s4415_s14, %s3523_s22  ;;  %p3527_p11 = scmp.lt.u32.totalorder %s3523_s22, %s4415_s14 }
0x4aa1   :  { %p3529_p12 = pnand %p3527_p11, %p3524_p10 }
0x4aa3   :  { %3532 = shalt.err (!%p3529_p12)
}
0x4aa4   :  { %2787 = dma.vmem_to_hbm [thread:$0]  %s2785_s25, 32, %s4415_s14, [#allocation3]   ;;  %3490 = vpow2.f32 %v2888_v23 }
0x4aa5   :  { %s3569_s1 = smov [#allocation6]  }
0x4aa6   :  { %s2794_s5 = sshll.u32 %s3569_s1, 4  ;;  %s2795_s5 = int_to_ptr.vmem [resolvable:$true] %s2794_s5 }
0x4aa7   :  { %s3533_s18 = scalar_lea.vmem %s2795_s5, 32  ;;  %p3538_p0 = scmp.lt.s32.totalorder %s2795_s5, %s2795_s5 }
0x4aa8   :  { %p3534_p13 = scmp.ne.s32.totalorder %s2795_s5, %s3533_s18  ;;  %p3539_p1 = scmp.lt.s32.totalorder %s3533_s18, %s3533_s18 }
0x4aaa   :  { %p3540_p2 = por %p3539_p1, %p3538_p0 }
0x4aac   :  { %p3541_p3 = pnand %p3540_p2, %p3534_p13 }
0x4aae   :  { %v3491_v17 = vpop.eup %3490 }
0x4aaf   :  { %v2772_v18 = vadd.f32 1.0, %v3491_v17 }
0x4ab1   :  { %3492 = vrcp.f32 %v2772_v18 }
0x4abb   :  { %v3493_v11 = vpop.eup %3492 }
0x4abc   :  { %v2775_v25 = vmul.f32 0.9, %v3493_v11 }
0x4abe   :  { %v2776_v22 = vadd.f32 0.1, %v2775_v25 }
0x4ac0   :  { %2777 = vst.msk [vmem:[#allocation6] sm:$0x3] %vm2767_vm4, %v2776_v22 }
0x4ac1   :  { %3544 = shalt.err (!%p3541_p3)
}
0x4ac2   :  { %s3545_s19 = scalar_lea.hbm %s4416_s15, 32 }
0x4ac3   :  { %p3546_p4 = scmp.ne.s32.totalorder %s4416_s15, %s3545_s19  ;;  %p3549_p5 = scmp.lt.u32.totalorder %s3545_s19, %s4416_s15 }
0x4ac5   :  { %p3551_p6 = pnand %p3549_p5, %p3546_p4 }
0x4ac7   :  { %3554 = shalt.err (!%p3551_p6)
}
0x4ac8   :  { %2797 = dma.vmem_to_hbm [thread:$0]  %s2795_s5, 32, %s4416_s15, [#allocation7]  }
0x4ac9   :  { %3557 = dma.done.wait [#allocation3], 32  }
0x4aca   :  { %3558 = vsyncadd [#allocation3], 4294967264 }
0x4acb   :  { %3559 = dma.done.wait [#allocation7], 32  }
0x4acc   :  { %3560 = vsyncadd [#allocation7], 4294967264 }
0x4acd   :  { %2804 = vsyncpa [#allocation3], 1 }
0x4ace   :  { %2805 = vsyncpa [#allocation7], 1 }
0x4acf   :  { %2806 = vsyncpa [#allocation4], 1 }

</bundles_post_ra>
